<compile_context>
chip_gen: v7x
topology: tpu7x:2x2x1
jax: 0.10.0
libtpu: 0.0.40
codegen_flags: <defaults>
</compile_context>

<pallas_src>
import jax
import jax.numpy as jnp
from jax import lax
from jax.experimental import pallas as pl
from jax.experimental.pallas import tpu as pltpu

# ----- static problem sizes (from the module definition) ---------------------
N = 2              # batch
L = 32             # sequence length (forced: L // 2 must equal fc.in_features)
C = 16             # conv1 output channels
K = 3              # conv1 kernel size
LP = L // 2        # pooled length == fc.in_features == 16
J = 5              # num_classes
BN_EPS = 1e-5


def voice_kernel(x_ref, wconv_ref, gamma_ref, beta_ref, fcw_ref, fcb_ref, out_ref):
    # x_ref    : (N, L)      input with the size-1 channel dim squeezed   [VMEM]
    # wconv_ref: (K, C)      conv1 weight as (tap, out_channel)           [VMEM]
    # gamma_ref: (1, C)      BN scale     beta_ref: (1, C) BN shift       [VMEM]
    # fcw_ref  : (J, LP, 1)  fc weight, per-class column along sublanes   [VMEM]
    # fcb_ref  : (J,)        fc bias scalars                              [SMEM]
    # out_ref  : (J, N, C)   out[j, n, c] == torch_out[n, c, j]           [VMEM]

    x = x_ref[...]                                           # (N, L)

    # ---- Conv1d(1 -> C, kernel=3, stride=1, pad=1, bias=False) --------------
    # zero-padded shifted copies built in-kernel (no wrapper-side jnp.pad).
    lane = lax.broadcasted_iota(jnp.int32, (N, L), 1)
    x_prev = jnp.where(lane == 0, 0.0, pltpu.roll(x, shift=1, axis=1))          # x[l-1]
    x_next = jnp.where(lane == L - 1, 0.0, pltpu.roll(x, shift=L - 1, axis=1))  # x[l+1]

    w = wconv_ref[...]                                       # (K, C)
    conv = (x_prev[:, :, None] * w[0:1, :][None]
            + x[:, :, None] * w[1:2, :][None]
            + x_next[:, :, None] * w[2:3, :][None])          # (N, L, C)

    # ---- BatchNorm1d: one-pass batch stats (biased var), folded scale/shift -
    inv_cnt = 1.0 / float(N * L)
    mean = jnp.sum(conv, axis=(0, 1), keepdims=True) * inv_cnt            # (1,1,C)
    mean_sq = jnp.sum(conv * conv, axis=(0, 1), keepdims=True) * inv_cnt  # (1,1,C)
    var = mean_sq - mean * mean
    scale = gamma_ref[...][None] * lax.rsqrt(var + BN_EPS)                # (1,1,C)
    shift = beta_ref[...][None] - mean * scale
    # TODO(synk): running_mean/running_var buffer updates (training side effect)
    # are not materialized; the forward output uses batch stats as torch does.

    # ---- ReLU (fused with the folded BN apply) -------------------------------
    act = jnp.maximum(conv * scale + shift, 0.0)             # (N, L, C)

    # ---- MaxPool1d(kernel=2, stride=2) over the length axis ------------------
    pooled = jnp.max(act.reshape(N, LP, 2, C), axis=2)       # (N, LP, C)

    # ---- Linear(LP -> J): VPU broadcast-FMA + sublane reduction --------------
    # out[j, n, c] = sum_lp pooled[n, lp, c] * fcw[j, lp] + fcb[j]
    for j in range(J):                                       # static unroll, J=5
        wj = fcw_ref[j]                                      # (LP, 1) sublane-major
        out_ref[j] = jnp.sum(pooled * wj[None, :, :], axis=1) + fcb_ref[j]   # (N, C)


def prepare_params(conv_w, gamma, beta, fc_w, fc_b):
    """One-time (init) parameter re-layout so the per-call path has no aux XLA ops."""
    w_kc = jnp.transpose(conv_w[:, 0, :].astype(jnp.float32), (1, 0))   # (K, C)
    gamma2 = gamma.astype(jnp.float32).reshape(1, C)                    # (1, C)
    beta2 = beta.astype(jnp.float32).reshape(1, C)                      # (1, C)
    fcw3 = fc_w.astype(jnp.float32).reshape(J, LP, 1)                   # (J, LP, 1)
    fcb1 = fc_b.astype(jnp.float32).reshape(J)                          # (J,)
    return w_kc, gamma2, beta2, fcw3, fcb1


@jax.jit
def voice_forward(x, w_kc, gamma2, beta2, fcw3, fcb1):
    """x: (N,1,L) f32; remaining args come from prepare_params (done once)."""
    xr = x.astype(jnp.float32).reshape(N, L)     # metadata-only squeeze of channel dim
    vmem = pl.BlockSpec(memory_space=pltpu.MemorySpace.VMEM)
    smem = pl.BlockSpec(memory_space=pltpu.MemorySpace.SMEM)
    out_jnc = pl.pallas_call(
        voice_kernel,
        out_shape=jax.ShapeDtypeStruct((J, N, C), jnp.float32),
        in_specs=[vmem, vmem, vmem, vmem, vmem, smem],
        out_specs=vmem,
        cost_estimate=pl.CostEstimate(flops=20_000, transcendentals=C,
                                      bytes_accessed=2_048),
    )(xr, w_kc, gamma2, beta2, fcw3, fcb1)
    # back to PyTorch's (N, C, num_classes) layout
    return jnp.transpose(out_jnc, (1, 2, 0))


def ref_forward(x, conv_w, gamma, beta, fc_w, fc_b):
    """Pure-JAX reference mirroring the PyTorch forward (NCL layout)."""
    conv = lax.conv_general_dilated(
        x.astype(jnp.float32), conv_w.astype(jnp.float32),
        window_strides=(1,), padding=((1, 1),),
        dimension_numbers=("NCH", "OIH", "NCH"))                           # (N, C, L)
    mean = jnp.mean(conv, axis=(0, 2), keepdims=True)
    var = jnp.mean((conv - mean) ** 2, axis=(0, 2), keepdims=True)
    bn = (conv - mean) / jnp.sqrt(var + BN_EPS) * gamma[None, :, None] + beta[None, :, None]
    act = jnp.maximum(bn, 0.0)
    pooled = jnp.max(act.reshape(N, C, LP, 2), axis=-1)                    # (N, C, LP)
    return jnp.einsum("ncl,jl->ncj", pooled, fc_w) + fc_b[None, None, :]   # (N, C, J)


if __name__ == "__main__":
    key = jax.random.PRNGKey(0)
    k1, k2, k3, k4, k5, k6 = jax.random.split(key, 6)

    # deterministic synthetic parameters (shapes from Voice.__init__)
    x = jax.random.normal(k1, (N, 1, L), jnp.float32)                    # input
    conv_w = 0.3 * jax.random.normal(k2, (C, 1, K), jnp.float32)         # conv1.weight
    gamma = 1.0 + 0.1 * jax.random.normal(k3, (C,), jnp.float32)         # bn1.weight
    beta = 0.1 * jax.random.normal(k4, (C,), jnp.float32)                # bn1.bias
    fc_w = 0.2 * jax.random.normal(k5, (J, LP), jnp.float32)             # fc.weight
    fc_b = 0.1 * jax.random.normal(k6, (J,), jnp.float32)                # fc.bias

    # init-time parameter prep (done once, outside the per-call path)
    params = jax.tree_util.tree_map(jax.block_until_ready,
                                    prepare_params(conv_w, gamma, beta, fc_w, fc_b))

    out = jax.block_until_ready(voice_forward(x, *params))
    ref = ref_forward(x, conv_w, gamma, beta, fc_w, fc_b)

    assert out.shape == (N, C, J), out.shape
    assert jnp.allclose(out, ref, atol=1e-4, rtol=1e-4), float(jnp.max(jnp.abs(out - ref)))
    print("KERNEL_OK")
</pallas_src>

<mosaic_0001>
module attributes {stable_mosaic.version = 11 : i64} {
  func.func @voice_kernel(%arg0: memref<2x32xf32, #tpu.memory_space<vmem>>, %arg1: memref<3x16xf32, #tpu.memory_space<vmem>>, %arg2: memref<1x16xf32, #tpu.memory_space<vmem>>, %arg3: memref<1x16xf32, #tpu.memory_space<vmem>>, %arg4: memref<5x16x1xf32, #tpu.memory_space<vmem>>, %arg5: memref<5xf32, #tpu.memory_space<smem>>, %arg6: memref<5x2x16xf32, #tpu.memory_space<vmem>>) attributes {dimension_semantics = [], scalar_prefetch = 0 : i64, scratch_operands = 0 : i64, tpu.core_type = #tpu.core_type<tc>} {
    %c0 = arith.constant 0 : index
    %c0_0 = arith.constant 0 : index
    %0 = vector.load %arg0[%c0, %c0_0] : memref<2x32xf32, #tpu.memory_space<vmem>>, vector<2x32xf32>
    %1 = tpu.iota {dimensions = array<i32: 1>} : vector<2x32xi32>
    %c0_i32 = arith.constant 0 : i32
    %2 = vector.broadcast %c0_i32 : i32 to vector<2x32xi32>
    %3 = arith.cmpi eq, %1, %2 : vector<2x32xi32>
    %c1_i32 = arith.constant 1 : i32
    %4 = tpu.dynamic_rotate %0 by %c1_i32 dim 1 : vector<2x32xf32>, i32 -> vector<2x32xf32>
    %cst = arith.constant 0.000000e+00 : f32
    %5 = vector.broadcast %cst : f32 to vector<2x32xf32>
    %6 = arith.select %3, %5, %4 : vector<2x32xi1>, vector<2x32xf32>
    %c31_i32 = arith.constant 31 : i32
    %7 = vector.broadcast %c31_i32 : i32 to vector<2x32xi32>
    %8 = arith.cmpi eq, %1, %7 : vector<2x32xi32>
    %c31_i32_1 = arith.constant 31 : i32
    %9 = tpu.dynamic_rotate %0 by %c31_i32_1 dim 1 : vector<2x32xf32>, i32 -> vector<2x32xf32>
    %cst_2 = arith.constant 0.000000e+00 : f32
    %10 = vector.broadcast %cst_2 : f32 to vector<2x32xf32>
    %11 = arith.select %8, %10, %9 : vector<2x32xi1>, vector<2x32xf32>
    %c0_3 = arith.constant 0 : index
    %c0_4 = arith.constant 0 : index
    %12 = vector.load %arg1[%c0_3, %c0_4] : memref<3x16xf32, #tpu.memory_space<vmem>>, vector<3x16xf32>
    %13 = vector.shape_cast %6 : vector<2x32xf32> to vector<2x32x1xf32>
    %14 = vector.extract_strided_slice %12 {offsets = [0, 0], sizes = [1, 16], strides = [1, 1]} : vector<3x16xf32> to vector<1x16xf32>
    %15 = vector.shape_cast %14 : vector<1x16xf32> to vector<1x1x16xf32>
    %16 = vector.broadcast %13 : vector<2x32x1xf32> to vector<2x32x16xf32>
    %17 = vector.broadcast %15 : vector<1x1x16xf32> to vector<2x32x16xf32>
    %18 = arith.mulf %16, %17 : vector<2x32x16xf32>
    %19 = vector.shape_cast %0 : vector<2x32xf32> to vector<2x32x1xf32>
    %20 = vector.extract_strided_slice %12 {offsets = [1, 0], sizes = [1, 16], strides = [1, 1]} : vector<3x16xf32> to vector<1x16xf32>
    %21 = vector.shape_cast %20 : vector<1x16xf32> to vector<1x1x16xf32>
    %22 = vector.broadcast %19 : vector<2x32x1xf32> to vector<2x32x16xf32>
    %23 = vector.broadcast %21 : vector<1x1x16xf32> to vector<2x32x16xf32>
    %24 = arith.mulf %22, %23 : vector<2x32x16xf32>
    %25 = arith.addf %18, %24 : vector<2x32x16xf32>
    %26 = vector.shape_cast %11 : vector<2x32xf32> to vector<2x32x1xf32>
    %27 = vector.extract_strided_slice %12 {offsets = [2, 0], sizes = [1, 16], strides = [1, 1]} : vector<3x16xf32> to vector<1x16xf32>
    %28 = vector.shape_cast %27 : vector<1x16xf32> to vector<1x1x16xf32>
    %29 = vector.broadcast %26 : vector<2x32x1xf32> to vector<2x32x16xf32>
    %30 = vector.broadcast %28 : vector<1x1x16xf32> to vector<2x32x16xf32>
    %31 = arith.mulf %29, %30 : vector<2x32x16xf32>
    %32 = arith.addf %25, %31 : vector<2x32x16xf32>
    %cst_5 = arith.constant dense<0.000000e+00> : vector<16xf32>
    %33 = vector.multi_reduction <add>, %32, %cst_5 [0, 1] : vector<2x32x16xf32> to vector<16xf32>
    %34 = vector.shape_cast %33 : vector<16xf32> to vector<1x1x16xf32>
    %cst_6 = arith.constant 1.562500e-02 : f32
    %35 = vector.broadcast %cst_6 : f32 to vector<1x1x16xf32>
    %36 = arith.mulf %34, %35 : vector<1x1x16xf32>
    %37 = arith.mulf %32, %32 : vector<2x32x16xf32>
    %cst_7 = arith.constant dense<0.000000e+00> : vector<16xf32>
    %38 = vector.multi_reduction <add>, %37, %cst_7 [0, 1] : vector<2x32x16xf32> to vector<16xf32>
    %39 = vector.shape_cast %38 : vector<16xf32> to vector<1x1x16xf32>
    %cst_8 = arith.constant 1.562500e-02 : f32
    %40 = vector.broadcast %cst_8 : f32 to vector<1x1x16xf32>
    %41 = arith.mulf %39, %40 : vector<1x1x16xf32>
    %42 = arith.mulf %36, %36 : vector<1x1x16xf32>
    %43 = arith.subf %41, %42 : vector<1x1x16xf32>
    %c0_9 = arith.constant 0 : index
    %c0_10 = arith.constant 0 : index
    %44 = vector.load %arg2[%c0_9, %c0_10] : memref<1x16xf32, #tpu.memory_space<vmem>>, vector<1x16xf32>
    %45 = vector.shape_cast %44 : vector<1x16xf32> to vector<1x1x16xf32>
    %cst_11 = arith.constant 9.99999974E-6 : f32
    %46 = vector.broadcast %cst_11 : f32 to vector<1x1x16xf32>
    %47 = arith.addf %43, %46 : vector<1x1x16xf32>
    %48 = math.rsqrt %47 : vector<1x1x16xf32>
    %49 = arith.mulf %45, %48 : vector<1x1x16xf32>
    %c0_12 = arith.constant 0 : index
    %c0_13 = arith.constant 0 : index
    %50 = vector.load %arg3[%c0_12, %c0_13] : memref<1x16xf32, #tpu.memory_space<vmem>>, vector<1x16xf32>
    %51 = vector.shape_cast %50 : vector<1x16xf32> to vector<1x1x16xf32>
    %52 = arith.mulf %36, %49 : vector<1x1x16xf32>
    %53 = arith.subf %51, %52 : vector<1x1x16xf32>
    %54 = vector.broadcast %49 : vector<1x1x16xf32> to vector<2x32x16xf32>
    %55 = arith.mulf %32, %54 : vector<2x32x16xf32>
    %56 = vector.broadcast %53 : vector<1x1x16xf32> to vector<2x32x16xf32>
    %57 = arith.addf %55, %56 : vector<2x32x16xf32>
    %cst_14 = arith.constant 0.000000e+00 : f32
    %58 = vector.broadcast %cst_14 : f32 to vector<2x32x16xf32>
    %59 = arith.maximumf %57, %58 : vector<2x32x16xf32>
    %60 = vector.shape_cast %59 : vector<2x32x16xf32> to vector<2x16x2x16xf32>
    %cst_15 = arith.constant dense<0xFF800000> : vector<2x16x16xf32>
    %61 = vector.multi_reduction <maximumf>, %60, %cst_15 [2] : vector<2x16x2x16xf32> to vector<2x16x16xf32>
    %c0_16 = arith.constant 0 : index
    %c0_17 = arith.constant 0 : index
    %c0_18 = arith.constant 0 : index
    %62 = vector.load %arg4[%c0_16, %c0_17, %c0_18] : memref<5x16x1xf32, #tpu.memory_space<vmem>>, vector<1x16x1xf32>
    %63 = vector.shape_cast %62 : vector<1x16x1xf32> to vector<16x1xf32>
    %64 = vector.shape_cast %63 : vector<16x1xf32> to vector<1x16x1xf32>
    %65 = vector.broadcast %64 : vector<1x16x1xf32> to vector<2x16x16xf32>
    %66 = arith.mulf %61, %65 : vector<2x16x16xf32>
    %cst_19 = arith.constant dense<0.000000e+00> : vector<2x16xf32>
    %67 = vector.multi_reduction <add>, %66, %cst_19 [1] : vector<2x16x16xf32> to vector<2x16xf32>
    %c0_20 = arith.constant 0 : index
    %68 = memref.load %arg5[%c0_20] : memref<5xf32, #tpu.memory_space<smem>>
    %69 = vector.broadcast %68 : f32 to vector<2x16xf32>
    %70 = arith.addf %67, %69 : vector<2x16xf32>
    %c0_21 = arith.constant 0 : index
    %c0_22 = arith.constant 0 : index
    %c0_23 = arith.constant 0 : index
    %71 = vector.load %arg6[%c0_21, %c0_22, %c0_23] : memref<5x2x16xf32, #tpu.memory_space<vmem>>, vector<1x2x16xf32>
    %72 = vector.shape_cast %71 : vector<1x2x16xf32> to vector<2x16xf32>
    %73 = vector.shape_cast %70 : vector<2x16xf32> to vector<1x2x16xf32>
    tpu.vector_store %arg6[%c0_21, %c0_22, %c0_23], %73 {strides = array<i32>} : memref<5x2x16xf32, #tpu.memory_space<vmem>>, vector<1x2x16xf32>,
    %c1 = arith.constant 1 : index
    %c0_24 = arith.constant 0 : index
    %c0_25 = arith.constant 0 : index
    %74 = vector.load %arg4[%c1, %c0_24, %c0_25] : memref<5x16x1xf32, #tpu.memory_space<vmem>>, vector<1x16x1xf32>
    %75 = vector.shape_cast %74 : vector<1x16x1xf32> to vector<16x1xf32>
    %76 = vector.shape_cast %75 : vector<16x1xf32> to vector<1x16x1xf32>
    %77 = vector.broadcast %76 : vector<1x16x1xf32> to vector<2x16x16xf32>
    %78 = arith.mulf %61, %77 : vector<2x16x16xf32>
    %cst_26 = arith.constant dense<0.000000e+00> : vector<2x16xf32>
    %79 = vector.multi_reduction <add>, %78, %cst_26 [1] : vector<2x16x16xf32> to vector<2x16xf32>
    %c1_27 = arith.constant 1 : index
    %80 = memref.load %arg5[%c1_27] : memref<5xf32, #tpu.memory_space<smem>>
    %81 = vector.broadcast %80 : f32 to vector<2x16xf32>
    %82 = arith.addf %79, %81 : vector<2x16xf32>
    %c1_28 = arith.constant 1 : index
    %c0_29 = arith.constant 0 : index
    %c0_30 = arith.constant 0 : index
    %83 = vector.load %arg6[%c1_28, %c0_29, %c0_30] : memref<5x2x16xf32, #tpu.memory_space<vmem>>, vector<1x2x16xf32>
    %84 = vector.shape_cast %83 : vector<1x2x16xf32> to vector<2x16xf32>
    %85 = vector.shape_cast %82 : vector<2x16xf32> to vector<1x2x16xf32>
    tpu.vector_store %arg6[%c1_28, %c0_29, %c0_30], %85 {strides = array<i32>} : memref<5x2x16xf32, #tpu.memory_space<vmem>>, vector<1x2x16xf32>,
    %c2 = arith.constant 2 : index
    %c0_31 = arith.constant 0 : index
    %c0_32 = arith.constant 0 : index
    %86 = vector.load %arg4[%c2, %c0_31, %c0_32] : memref<5x16x1xf32, #tpu.memory_space<vmem>>, vector<1x16x1xf32>
    %87 = vector.shape_cast %86 : vector<1x16x1xf32> to vector<16x1xf32>
    %88 = vector.shape_cast %87 : vector<16x1xf32> to vector<1x16x1xf32>
    %89 = vector.broadcast %88 : vector<1x16x1xf32> to vector<2x16x16xf32>
    %90 = arith.mulf %61, %89 : vector<2x16x16xf32>
    %cst_33 = arith.constant dense<0.000000e+00> : vector<2x16xf32>
    %91 = vector.multi_reduction <add>, %90, %cst_33 [1] : vector<2x16x16xf32> to vector<2x16xf32>
    %c2_34 = arith.constant 2 : index
    %92 = memref.load %arg5[%c2_34] : memref<5xf32, #tpu.memory_space<smem>>
    %93 = vector.broadcast %92 : f32 to vector<2x16xf32>
    %94 = arith.addf %91, %93 : vector<2x16xf32>
    %c2_35 = arith.constant 2 : index
    %c0_36 = arith.constant 0 : index
    %c0_37 = arith.constant 0 : index
    %95 = vector.load %arg6[%c2_35, %c0_36, %c0_37] : memref<5x2x16xf32, #tpu.memory_space<vmem>>, vector<1x2x16xf32>
    %96 = vector.shape_cast %95 : vector<1x2x16xf32> to vector<2x16xf32>
    %97 = vector.shape_cast %94 : vector<2x16xf32> to vector<1x2x16xf32>
    tpu.vector_store %arg6[%c2_35, %c0_36, %c0_37], %97 {strides = array<i32>} : memref<5x2x16xf32, #tpu.memory_space<vmem>>, vector<1x2x16xf32>,
    %c3 = arith.constant 3 : index
    %c0_38 = arith.constant 0 : index
    %c0_39 = arith.constant 0 : index
    %98 = vector.load %arg4[%c3, %c0_38, %c0_39] : memref<5x16x1xf32, #tpu.memory_space<vmem>>, vector<1x16x1xf32>
    %99 = vector.shape_cast %98 : vector<1x16x1xf32> to vector<16x1xf32>
    %100 = vector.shape_cast %99 : vector<16x1xf32> to vector<1x16x1xf32>
    %101 = vector.broadcast %100 : vector<1x16x1xf32> to vector<2x16x16xf32>
    %102 = arith.mulf %61, %101 : vector<2x16x16xf32>
    %cst_40 = arith.constant dense<0.000000e+00> : vector<2x16xf32>
    %103 = vector.multi_reduction <add>, %102, %cst_40 [1] : vector<2x16x16xf32> to vector<2x16xf32>
    %c3_41 = arith.constant 3 : index
    %104 = memref.load %arg5[%c3_41] : memref<5xf32, #tpu.memory_space<smem>>
    %105 = vector.broadcast %104 : f32 to vector<2x16xf32>
    %106 = arith.addf %103, %105 : vector<2x16xf32>
    %c3_42 = arith.constant 3 : index
    %c0_43 = arith.constant 0 : index
    %c0_44 = arith.constant 0 : index
    %107 = vector.load %arg6[%c3_42, %c0_43, %c0_44] : memref<5x2x16xf32, #tpu.memory_space<vmem>>, vector<1x2x16xf32>
    %108 = vector.shape_cast %107 : vector<1x2x16xf32> to vector<2x16xf32>
    %109 = vector.shape_cast %106 : vector<2x16xf32> to vector<1x2x16xf32>
    tpu.vector_store %arg6[%c3_42, %c0_43, %c0_44], %109 {strides = array<i32>} : memref<5x2x16xf32, #tpu.memory_space<vmem>>, vector<1x2x16xf32>,
    %c4 = arith.constant 4 : index
    %c0_45 = arith.constant 0 : index
    %c0_46 = arith.constant 0 : index
    %110 = vector.load %arg4[%c4, %c0_45, %c0_46] : memref<5x16x1xf32, #tpu.memory_space<vmem>>, vector<1x16x1xf32>
    %111 = vector.shape_cast %110 : vector<1x16x1xf32> to vector<16x1xf32>
    %112 = vector.shape_cast %111 : vector<16x1xf32> to vector<1x16x1xf32>
    %113 = vector.broadcast %112 : vector<1x16x1xf32> to vector<2x16x16xf32>
    %114 = arith.mulf %61, %113 : vector<2x16x16xf32>
    %cst_47 = arith.constant dense<0.000000e+00> : vector<2x16xf32>
    %115 = vector.multi_reduction <add>, %114, %cst_47 [1] : vector<2x16x16xf32> to vector<2x16xf32>
    %c4_48 = arith.constant 4 : index
    %116 = memref.load %arg5[%c4_48] : memref<5xf32, #tpu.memory_space<smem>>
    %117 = vector.broadcast %116 : f32 to vector<2x16xf32>
    %118 = arith.addf %115, %117 : vector<2x16xf32>
    %c4_49 = arith.constant 4 : index
    %c0_50 = arith.constant 0 : index
    %c0_51 = arith.constant 0 : index
    %119 = vector.load %arg6[%c4_49, %c0_50, %c0_51] : memref<5x2x16xf32, #tpu.memory_space<vmem>>, vector<1x2x16xf32>
    %120 = vector.shape_cast %119 : vector<1x2x16xf32> to vector<2x16xf32>
    %121 = vector.shape_cast %118 : vector<2x16xf32> to vector<1x2x16xf32>
    tpu.vector_store %arg6[%c4_49, %c0_50, %c0_51], %121 {strides = array<i32>} : memref<5x2x16xf32, #tpu.memory_space<vmem>>, vector<1x2x16xf32>,
    return
  }
}

</mosaic_0001>

<bundles_post_ra>
// kernel: voice_forward.1
= control target key start
LH: loop header
LB: loop body
LE: loop exit
PB: predicated region body
PF: predicated region fallthrough
CT: control target
= control target key end

     0   :  { %11 = vsyncpa [#allocation4], 0  ;;  %s2973_s0 = inlined_call_operand.vmem [shape: f32[2,32], index: 0, kind: input, shape index: {}]   ;;  %s2974_s1 = inlined_call_operand.vmem [shape: f32[3,16], index: 1, kind: input, shape index: {}]   ;;  %s2975_s2 = inlined_call_operand.vmem [shape: f32[1,16], index: 2, kind: input, shape index: {}]   ;;  %s2976_s3 = inlined_call_operand.vmem [shape: f32[1,16], index: 3, kind: input, shape index: {}]   ;;  %s2977_s4 = inlined_call_operand.vmem [shape: f32[5,16,1], index: 4, kind: input, shape index: {}]   ;;  %s2978_s5 = inlined_call_operand.vmem [shape: f32[5], index: 5, kind: input, shape index: {}]   ;;  %s2979_s6 = inlined_call_operand.hbm [shape: f32[5,2,16], index: 6, kind: output, shape index: {}]  }
   0x1   :  { %12 = vsyncpa [#allocation3], 0  ;;  %s29_s23 = sshll.u32 %s2978_s5, 4  ;;  %s30_s23 = int_to_ptr.vmem [resolvable:$true] %s29_s23 }
   0x2   :  { %s1740_s24 = scalar_lea.vmem %s30_s23, 16  ;;  %p1745_p1 = scmp.lt.s32.totalorder %s30_s23, %s30_s23 }
   0x3   :  { %p1741_p0 = scmp.ne.s32.totalorder %s30_s23, %s1740_s24  ;;  %p1746_p2 = scmp.lt.s32.totalorder %s1740_s24, %s1740_s24 }
   0x5   :  { %p1747_p3 = por %p1746_p2, %p1745_p1 }
   0x7   :  { %p1748_p4 = pnand %p1747_p3, %p1741_p0 }
   0x9   :  { %1751 = shalt.err (!%p1748_p4)
}
   0xa   :  { %s1778_s25 = smov [#allocation2]  }
   0xb   :  { %32 = dma.vmem_to_smem %s30_s23, 16, %s1778_s25, [#allocation4]  }
   0xc   :  { %1774 = dma.done.wait [#allocation4], 16  }
   0xd   :  { %1775 = vsyncadd [#allocation4], 4294967280 }
   0xe   :  { %36 = sfence }
   0xf   :  { %v37_v0 = vld [vmem:[%s2973_s0] sm:$0x3]  ;;  %s1779_s28 = smov 32   ;;  %v38_v1 = vlaneseq  ;;  %vm41_vm0 = vcmask 1047808   ;;  %s1780_s0 = smov 97   ;;  %v1782_v11 = vmov 0  }
  0x10   :  { %42 = vrot.lane.b32.xlu0 %v37_v0, %s1779_s28  ;;  %s1781_s5 = smov 127   ;;  %1737 = vset.pattern.permute.xlu1 %v1782_v11  ;;  %v725_v21 = vld [vmem:[%s2977_s4 + $0x8] sm:$0xff]  ;;  %v1716_v22 = vld [vmem:[%s2977_s4 + $0x10] sm:$0xff]  ;;  %v724_v23 = vld [vmem:[%s2977_s4] sm:$0xff]  ;;  %vm225_vm3 = vcmask 130048   ;;  %vm499_vm4 = vcmask 123904  }
  0x11   :  { %v1828_v2 = vshrl.u32 %v38_v1, 7  ;;  %1736 = vset.pattern.permute.xlu0 %v1782_v11  ;;  %v39_v12 = vand.u32 127, %v38_v1  ;;  %v1719_v24 = vld [vmem:[%s2977_s4 + $0x20] sm:$0xff]  ;;  %v1717_v25 = vld [vmem:[%s2977_s4 + $0x18] sm:$0xff]  ;;  %v1722_v26 = vld [vmem:[%s2977_s4 + $0x30] sm:$0xff]  ;;  %vm829_vm5 = vcmask 1041409  }
  0x12   :  { %v1720_v27 = vld [vmem:[%s2977_s4 + $0x28] sm:$0xff]  ;;  %v1725_v28 = vld [vmem:[%s2977_s4 + $0x40] sm:$0xff]  ;;  %v1723_v29 = vld [vmem:[%s2977_s4 + $0x38] sm:$0xff]  ;;  %vm832_vm6 = vcmask 1042434   ;;  %vm835_vm7 = vcmask 1043459   ;;  %vm838_vm8 = vcmask 1044484  }
  0x13   :  { %v1831_v4 = vsub.s32 0, %v1828_v2  ;;  %v1836_v7 = vsub.s32 1, %v1828_v2  ;;  %vm40_vm1 = vcmp.eq.s32.totalorder %v39_v12, 0  ;;  %vm53_vm2 = vcmp.eq.s32.totalorder %v39_v12, 31  ;;  %v1726_v30 = vld [vmem:[%s2977_s4 + $0x48] sm:$0xff]  ;;  %s2941_s29 = sld [smem:[#allocation2 + $0x3]] }
  0x14   :  { %v58_v41 = vld [vmem:[%s2974_s1] sm:$0x7]  ;;  %v207_v42 = vsub.s32 2, %v1828_v2  ;;  %vm841_vm9 = vcmask 1045509   ;;  %vm844_vm10 = vcmask 1046534   ;;  %vm847_vm11 = vcmask 1047559  }
  0x15   :  { %v112_v6 = vrot.slane %v37_v0, %v1831_v4  ;;  %v131_v8 = vrot.slane %v37_v0, %v1836_v7  ;;  %v1882_v45 = vrot.slane %v58_v41, %v1831_v4  ;;  %v1885_v46 = vrot.slane %v58_v41, %v1836_v7  ;;  %s2945_s30 = sld [smem:[#allocation2 + $0x4]]  ;;  %s1784_s7 = smov [#allocation5]  }
  0x16   :  { %v1887_v47 = vrot.slane %v58_v41, %v207_v42  ;;  %s1704_s8 = sshll.u32 %s1784_s7, 4  ;;  %s1705_s8 = int_to_ptr.vmem [resolvable:$true] %s1704_s8 }
  0x17   :  { %s1752_s9 = scalar_lea.vmem %s1705_s8, 160  ;;  %p1757_p6 = scmp.lt.s32.totalorder %s1705_s8, %s1705_s8 }
  0x18   :  { %p1753_p5 = scmp.ne.s32.totalorder %s1705_s8, %s1752_s9  ;;  %p1758_p7 = scmp.lt.s32.totalorder %s1752_s9, %s1752_s9 }
  0x1a   :  { %p1759_p8 = por %p1758_p7, %p1757_p6 }
  0x1c   :  { %p1760_p9 = pnand %p1759_p8, %p1753_p5 }
  0x82   :  { %v43_v3 = vpop.permute.xlu0 %42 }
  0x83   :  { %v44_v5 = vsel %vm41_vm0, %v43_v3, %v37_v0 }
  0x84   :  { %45 = vrot.lane.b32.xlu0 %v44_v5, %s1779_s28 }
  0x88   :  { %114 = vbcast.lane.b32.xlu0 %v112_v6, 256 }
  0x8c   :  { %133 = vbcast.lane.b32.xlu0 %v131_v8, 256 }
  0x90   :  { %141 = vbcast.lane.b32.xlu0 %v131_v8, 272 }
  0xf6   :  { %v46_v9 = vpop.permute.xlu0 %45 }
  0xf7   :  { %v47_v10 = vsel %vm41_vm0, %v46_v9, %v37_v0 }
  0xf8   :  { %49 = vrot.lane.b32.xlu1 %v47_v10, %s1780_s0  ;;  %s2881_s0 = sld [smem:[#allocation2 + $0x1]] }
  0xfa   :  { %v115_v34 = vpop.permute.xlu0 %114 }
  0xfb   :  { %v151_v52 = vmul.f32 %v1885_v46, %v115_v34 }
  0xfc   :  { %54 = vrot.lane.b32.xlu1 %v47_v10, %s1781_s5  ;;  %s2933_s5 = sld [smem:[#allocation2 + $0x2]] }
  0xfe   :  { %v134_v36 = vpop.permute.xlu0 %133 }
 0x100   :  { %118 = vbcast.lane.b32.xlu1 %v112_v6, 264 }
 0x102   :  { %v1875_v38 = vpop.permute.xlu0 %141 }
 0x104   :  { %122 = vbcast.lane.b32.xlu1 %v112_v6, 272 }
 0x108   :  { %126 = vbcast.lane.b32.xlu1 %v112_v6, 280 }
 0x10c   :  { %137 = vbcast.lane.b32.xlu1 %v131_v8, 264 }
 0x110   :  { %145 = vbcast.lane.b32.xlu1 %v131_v8, 280 }
 0x16a   :  { %v50_v13 = vpop.permute.xlu1 %49 }
 0x16b   :  { %v52_v14 = vsel %vm40_vm1, 0.0, %v50_v13 }
 0x16c   :  { %v62_v15 = vrot.slane %v52_v14, %v1831_v4  ;;  %v81_v19 = vrot.slane %v52_v14, %v1836_v7 }
 0x16e   :  { %v55_v16 = vpop.permute.xlu1 %54  ;;  %68 = vbcast.lane.b32.xlu1 %v62_v15, 264  ;;  %64 = vbcast.lane.b32.xlu0 %v62_v15, 256 }
 0x16f   :  { %v57_v17 = vsel %vm53_vm2, 0.0, %v55_v16 }
 0x170   :  { %v170_v18 = vrot.slane %v57_v17, %v1831_v4  ;;  %v189_v20 = vrot.slane %v57_v17, %v1836_v7 }
 0x172   :  { %176 = vbcast.lane.b32.xlu1 %v170_v18, 264  ;;  %72 = vbcast.lane.b32.xlu0 %v62_v15, 272  ;;  %v119_v31 = vpop.permute.xlu1 %118 }
 0x173   :  { %v152_v54 = vmul.f32 %v1885_v46, %v119_v31 }
 0x176   :  { %83 = vbcast.lane.b32.xlu1 %v81_v19, 256  ;;  %172 = vbcast.lane.b32.xlu0 %v170_v18, 256  ;;  %v123_v32 = vpop.permute.xlu1 %122 }
 0x177   :  { %v153_v61 = vmul.f32 %v1885_v46, %v123_v32 }
 0x17a   :  { %184 = vbcast.lane.b32.xlu1 %v170_v18, 280  ;;  %76 = vbcast.lane.b32.xlu0 %v62_v15, 280  ;;  %v127_v33 = vpop.permute.xlu1 %126 }
 0x17b   :  { %v154_v5 = vmul.f32 %v1885_v46, %v127_v33 }
 0x17e   :  { %91 = vbcast.lane.b32.xlu1 %v81_v19, 272  ;;  %180 = vbcast.lane.b32.xlu0 %v170_v18, 272  ;;  %v138_v35 = vpop.permute.xlu1 %137  ;;  %v155_v18 = vmul.f32 %v1885_v46, %v134_v36 }
 0x17f   :  { %v156_v17 = vmul.f32 %v1885_v46, %v138_v35 }
 0x182   :  { %195 = vbcast.lane.b32.xlu1 %v189_v20, 264  ;;  %87 = vbcast.lane.b32.xlu0 %v81_v19, 264  ;;  %v1873_v37 = vpop.permute.xlu1 %145 }
 0x186   :  { %203 = vbcast.lane.b32.xlu1 %v189_v20, 280  ;;  %191 = vbcast.lane.b32.xlu0 %v189_v20, 256 }
 0x18a   :  { %95 = vbcast.lane.b32.xlu0 %v81_v19, 280  ;;  %732 = vperm.xlu1 %1737, %v725_v21  }
 0x18e   :  { %199 = vbcast.lane.b32.xlu0 %v189_v20, 272  ;;  %928 = vperm.xlu1 %1737, %v1716_v22  }
 0x192   :  { %728 = vperm.xlu0 %1736, %v724_v23   ;;  %1122 = vperm.xlu1 %1737, %v1719_v24  }
 0x196   :  { %932 = vperm.xlu0 %1736, %v1717_v25   ;;  %1316 = vperm.xlu1 %1737, %v1722_v26  }
 0x19a   :  { %1126 = vperm.xlu0 %1736, %v1720_v27   ;;  %1510 = vperm.xlu1 %1737, %v1725_v28  }
 0x19e   :  { %1320 = vperm.xlu0 %1736, %v1723_v29  }
 0x1a2   :  { %1514 = vperm.xlu0 %1736, %v1726_v30  }
 0x1e0   :  { %v69_v39 = vpop.permute.xlu1 %68  ;;  %v65_v40 = vpop.permute.xlu0 %64 }
 0x1e1   :  { %v101_v50 = vmul.f32 %v1882_v45, %v65_v40  ;;  %v102_v51 = vmul.f32 %v1882_v45, %v69_v39  ;;  %v158_v39 = vmul.f32 %v1885_v46, %v1873_v37  ;;  %v157_v37 = vmul.f32 %v1885_v46, %v1875_v38 }
 0x1e3   :  { %v159_v58 = vadd.f32 %v151_v52, %v101_v50  ;;  %v160_v60 = vadd.f32 %v152_v54, %v102_v51 }
 0x1e4   :  { %v177_v43 = vpop.permute.xlu1 %176  ;;  %v73_v44 = vpop.permute.xlu0 %72 }
 0x1e5   :  { %v210_v55 = vmul.f32 %v1887_v47, %v177_v43  ;;  %v103_v59 = vmul.f32 %v1882_v45, %v73_v44 }
 0x1e7   :  { %v1900_v0 = vadd.f32 %v210_v55, %v160_v60  ;;  %v161_v6 = vadd.f32 %v153_v61, %v103_v59 }
 0x1e8   :  { %v84_v48 = vpop.permute.xlu1 %83  ;;  %v173_v49 = vpop.permute.xlu0 %172 }
 0x1e9   :  { %v209_v53 = vmul.f32 %v1887_v47, %v173_v49  ;;  %v249_v11 = vmul.f32 %v1900_v0, %v1900_v0  ;;  %v105_v13 = vmul.f32 %v1882_v45, %v84_v48  ;;  %v227_v21 = vsel %vm225_vm3, %v1900_v0, 0.0 }
 0x1eb   :  { %v1897_v62 = vadd.f32 %v209_v53, %v159_v58  ;;  %v257_v25 = vsel %vm225_vm3, %v249_v11, 0.0  ;;  %v163_v28 = vadd.f32 %v155_v18, %v105_v13 }
 0x1ec   :  { %v185_v56 = vpop.permute.xlu1 %184  ;;  %v77_v57 = vpop.permute.xlu0 %76 }
 0x1ed   :  { %v104_v63 = vmul.f32 %v1882_v45, %v77_v57  ;;  %v248_v8 = vmul.f32 %v1897_v62, %v1897_v62  ;;  %v226_v14 = vsel %vm225_vm3, %v1897_v62, 0.0  ;;  %v212_v15 = vmul.f32 %v1887_v47, %v185_v56 }
 0x1ee   :  { %v228_v26 = vadd.f32 %v227_v21, %v226_v14 }
 0x1ef   :  { %v162_v9 = vadd.f32 %v154_v5, %v104_v63  ;;  %v256_v22 = vsel %vm225_vm3, %v248_v8, 0.0 }
 0x1f0   :  { %v92_v1 = vpop.permute.xlu1 %91  ;;  %v181_v3 = vpop.permute.xlu0 %180  ;;  %v258_v32 = vadd.f32 %v257_v25, %v256_v22 }
 0x1f1   :  { %v211_v7 = vmul.f32 %v1887_v47, %v181_v3  ;;  %v1922_v23 = vadd.f32 %v212_v15, %v162_v9  ;;  %v107_v41 = vmul.f32 %v1882_v45, %v92_v1 }
 0x1f3   :  { %v1906_v10 = vadd.f32 %v211_v7, %v161_v6  ;;  %v251_v34 = vmul.f32 %v1922_v23, %v1922_v23  ;;  %v231_v40 = vsel %vm225_vm3, %v1922_v23, 0.0  ;;  %v165_v60 = vadd.f32 %v157_v37, %v107_v41 }
 0x1f4   :  { %v88_v12 = vpop.permute.xlu0 %87  ;;  %v196_v19 = vpop.permute.xlu1 %195 }
 0x1f5   :  { %v250_v16 = vmul.f32 %v1906_v10, %v1906_v10  ;;  %v106_v20 = vmul.f32 %v1882_v45, %v88_v12  ;;  %v229_v24 = vsel %vm225_vm3, %v1906_v10, 0.0  ;;  %v214_v35 = vmul.f32 %v1887_v47, %v196_v19 }
 0x1f6   :  { %v230_v33 = vadd.f32 %v229_v24, %v228_v26  ;;  %v261_v53 = vsel %vm225_vm3, %v251_v34, 0.0 }
 0x1f7   :  { %v259_v29 = vsel %vm225_vm3, %v250_v16, 0.0  ;;  %v164_v30 = vadd.f32 %v156_v17, %v106_v20 }
 0x1f8   :  { %v192_v27 = vpop.permute.xlu0 %191  ;;  %v260_v42 = vadd.f32 %v259_v29, %v258_v32  ;;  %v204_v43 = vpop.permute.xlu1 %203  ;;  %v232_v52 = vadd.f32 %v231_v40, %v230_v33 }
 0x1f9   :  { %v213_v31 = vmul.f32 %v1887_v47, %v192_v27  ;;  %v1939_v48 = vadd.f32 %v214_v35, %v164_v30  ;;  %v216_v54 = vmul.f32 %v1887_v47, %v204_v43 }
 0x1fa   :  { %v262_v57 = vadd.f32 %v261_v53, %v260_v42 }
 0x1fb   :  { %v1932_v36 = vadd.f32 %v213_v31, %v163_v28  ;;  %v253_v61 = vmul.f32 %v1939_v48, %v1939_v48  ;;  %v235_v46 = vsel %vm225_vm3, %v1939_v48, 0.0  ;;  %v1783_v31 = vmov 1983009808  }
 0x1fc   :  { %v96_v44 = vpop.permute.xlu0 %95  ;;  %v333_v32 = vunpack.c.l.s4 %v1783_v31 }
 0x1fd   :  { %v233_v49 = vsel %vm225_vm3, %v1932_v36, 0.0  ;;  %v252_v50 = vmul.f32 %v1932_v36, %v1932_v36  ;;  %v108_v51 = vmul.f32 %v1882_v45, %v96_v44  ;;  %v265_v5 = vsel %vm225_vm3, %v253_v61, 0.0 }
 0x1fe   :  { %v234_v58 = vadd.f32 %v233_v49, %v232_v52  ;;  %v334_v41 = vunpack.c.0.s8 %v333_v32  ;;  %v284_v32 = vld [vmem:[%s2976_s3] sm:$0x1]  ;;  %s2830_s3 = sld [smem:[#allocation2]] }
 0x1ff   :  { %v263_v55 = vsel %vm225_vm3, %v252_v50, 0.0  ;;  %v166_v56 = vadd.f32 %v158_v39, %v108_v51 }
 0x200   :  { %v200_v59 = vpop.permute.xlu0 %199  ;;  %v264_v38 = vadd.f32 %v263_v55, %v262_v57  ;;  %v236_v3 = vadd.f32 %v235_v46, %v234_v58  ;;  %v1982_v44 = vsub.s32 %v334_v41, %v1828_v2 }
 0x201   :  { %v1953_v63 = vadd.f32 %v216_v54, %v166_v56  ;;  %v215_v45 = vmul.f32 %v1887_v47, %v200_v59 }
 0x202   :  { %v266_v9 = vadd.f32 %v265_v5, %v264_v38 }
 0x203   :  { %v1958_v1 = vadd.f32 %v215_v45, %v165_v60  ;;  %v255_v6 = vmul.f32 %v1953_v63, %v1953_v63  ;;  %v239_v11 = vsel %vm225_vm3, %v1953_v63, 0.0 }
 0x205   :  { %v237_v7 = vsel %vm225_vm3, %v1958_v1, 0.0  ;;  %v254_v8 = vmul.f32 %v1958_v1, %v1958_v1  ;;  %v269_v15 = vsel %vm225_vm3, %v255_v6, 0.0 }
 0x206   :  { %v238_v47 = vadd.f32 %v237_v7, %v236_v3 }
 0x207   :  { %v267_v12 = vsel %vm225_vm3, %v254_v8, 0.0 }
 0x208   :  { %v240_v13 = vadd.f32 %v239_v11, %v238_v47  ;;  %v268_v14 = vadd.f32 %v267_v12, %v266_v9  ;;  %v280_v11 = vld [vmem:[%s2975_s2] sm:$0x1] }
 0x209   :  { %v1975_v35 = vpop.permute.xlu1 %732 }
 0x20a   :  { %v241_v16 = vrot.slane %v240_v13, 4  ;;  %v270_v17 = vadd.f32 %v269_v15, %v268_v14  ;;  %v741_v49 = vrot.slane %v1975_v35, 1  ;;  %v742_v50 = vrot.slane %v1975_v35, 2 }
 0x20b   :  { %v743_v51 = vrot.slane %v1975_v35, 3  ;;  %v744_v52 = vrot.slane %v1975_v35, 4  ;;  %v745_v53 = vrot.slane %v1975_v35, 5  ;;  %v746_v54 = vrot.slane %v1975_v35, 6 }
 0x20c   :  { %v242_v18 = vadd.f32 %v241_v16, %v240_v13  ;;  %v271_v19 = vrot.slane %v270_v17, 4  ;;  %v747_v55 = vrot.slane %v1975_v35, 7 }
 0x20d   :  { %v1979_v43 = vpop.permute.xlu1 %928 }
 0x20e   :  { %v243_v20 = vrot.slane %v242_v18, 2  ;;  %v272_v21 = vadd.f32 %v271_v19, %v270_v17 }
 0x210   :  { %v244_v22 = vadd.f32 %v243_v20, %v242_v18  ;;  %v273_v24 = vrot.slane %v272_v21, 2 }
 0x211   :  { %v1977_v40 = vpop.permute.xlu0 %728  ;;  %v2005_v6 = vpop.permute.xlu1 %1122 }
 0x212   :  { %v245_v25 = vrot.slane %v244_v22, 1  ;;  %v274_v26 = vadd.f32 %v273_v24, %v272_v21  ;;  %3002 = vst [vmem:[#allocation8_spill] sm:$0xff] %v2005_v6 }
 0x214   :  { %v246_v27 = vadd.f32 %v245_v25, %v244_v22  ;;  %v275_v28 = vrot.slane %v274_v26, 1 }
 0x215   :  { %v1987_v37 = vpop.permute.xlu0 %932 }
 0x216   :  { %v1971_v29 = vmul.f32 0.015625, %v246_v27  ;;  %v276_v30 = vadd.f32 %v275_v28, %v274_v26 }
 0x218   :  { %v277_v33 = vmul.f32 0.015625, %v276_v30  ;;  %v278_v34 = vmul.f32 %v1971_v29, %v1971_v29 }
 0x219   :  { %v2018_v16 = vpop.permute.xlu0 %1126 }
 0x21a   :  { %v279_v39 = vsub.f32 %v277_v33, %v278_v34  ;;  %3003 = vst [vmem:[#allocation9_spill] sm:$0xff] %v2018_v16 }
 0x21c   :  { %v281_v42 = vadd.f32 1e-05, %v279_v39 }
 0x21d   :  { %v2048_v41 = vpop.permute.xlu0 %1320 }
 0x21e   :  { %1738 = vrsqrt.f32 %v281_v42  ;;  %v2038_v42 = vpop.permute.xlu1 %1316  ;;  %3005 = vst [vmem:[#allocation11_spill] sm:$0xff] %v2048_v41 }
 0x21f   :  { %3004 = vst [vmem:[#allocation10_spill] sm:$0xff] %v2038_v42 }
 0x228   :  { %v1739_v21 = vpop.eup %1738 }
 0x229   :  { %v283_v27 = vmul.f32 %v1739_v21, %v280_v11 }
 0x22b   :  { %v285_v11 = vmul.f32 %v283_v27, %v1971_v29  ;;  %v291_v21 = vrot.slane %v283_v27, %v1831_v4 }
 0x22d   :  { %v286_v26 = vsub.f32 %v284_v32, %v285_v11  ;;  %v299_v30 = vmul.f32 %v291_v21, %v1958_v1  ;;  %v295_v39 = vmul.f32 %v291_v21, %v1906_v10  ;;  %v296_v32 = vmul.f32 %v291_v21, %v1922_v23 }
 0x22e   :  { %v300_v11 = vmul.f32 %v291_v21, %v1953_v63  ;;  %v293_v27 = vmul.f32 %v291_v21, %v1897_v62  ;;  %v294_v31 = vmul.f32 %v291_v21, %v1900_v0  ;;  %v297_v1 = vmul.f32 %v291_v21, %v1932_v36 }
 0x22f   :  { %v305_v34 = vrot.slane %v286_v26, %v1831_v4  ;;  %v298_v25 = vmul.f32 %v291_v21, %v1939_v48 }
 0x231   :  { %v313_v29 = vadd.f32 %v305_v34, %v299_v30  ;;  %v309_v28 = vadd.f32 %v305_v34, %v295_v39  ;;  %v310_v15 = vadd.f32 %v305_v34, %v296_v32  ;;  %v314_v33 = vadd.f32 %v305_v34, %v300_v11 }
 0x232   :  { %v307_v14 = vadd.f32 %v305_v34, %v293_v27  ;;  %v308_v4 = vadd.f32 %v305_v34, %v294_v31  ;;  %v311_v26 = vadd.f32 %v305_v34, %v297_v1  ;;  %v312_v10 = vadd.f32 %v305_v34, %v298_v25 }
 0x233   :  { %v321_v13 = vmax.f32 %v313_v29, 0.0  ;;  %v317_v23 = vmax.f32 %v309_v28, 0.0  ;;  %v318_v47 = vmax.f32 %v310_v15, 0.0  ;;  %v322_v62 = vmax.f32 %v314_v33, 0.0 }
 0x234   :  { %v2066_v9 = vmax.f32 %v307_v14, 0.0  ;;  %v2068_v0 = vmax.f32 %v308_v4, 0.0  ;;  %v2076_v15 = vmax.f32 %v311_v26, 0.0  ;;  %v2078_v28 = vmax.f32 %v312_v10, 0.0 }
 0x235   :  { %v433_v48 = vcombine.high %v321_v13, %v321_v13  ;;  %v440_v30 = vrot.slane %v321_v13, %v1982_v44  ;;  %v365_v39 = vcombine.high %v317_v23, %v317_v23  ;;  %v372_v31 = vrot.slane %v317_v23, %v1982_v44 }
 0x236   :  { %v382_v21 = vcombine.high %v318_v47, %v318_v47  ;;  %v2074_v25 = vrot.slane %v318_v47, %v1982_v44  ;;  %v450_v32 = vcombine.high %v322_v62, %v322_v62  ;;  %v2087_v11 = vrot.slane %v322_v62, %v1982_v44 }
 0x237   :  { %v447_v14 = vrot.slane %v433_v48, %v1982_v44  ;;  %v448_v33 = vcombine.high %v440_v30, %v440_v30  ;;  %v668_v34 = vsel %vm499_vm4, %v440_v30, -inf  ;;  %v379_v29 = vrot.slane %v365_v39, %v1982_v44 }
 0x238   :  { %v669_v27 = vrot.slane %v668_v34, 4  ;;  %v2084_v13 = vrot.slane %v382_v21, %v1982_v44  ;;  %v380_v26 = vcombine.high %v372_v31, %v372_v31  ;;  %v397_v30 = vcombine.high %v2074_v25, %v2074_v25 }
 0x239   :  { %v449_v47 = vcombine.high %v447_v14, %v447_v14  ;;  %v675_v1 = vsel %vm499_vm4, %v448_v33, -inf  ;;  %v682_v4 = vsel %vm499_vm4, %v447_v14, -inf  ;;  %v381_v21 = vcombine.high %v379_v29, %v379_v29 }
 0x23a   :  { %v670_v10 = vmax.f32 %v668_v34, %v669_v27  ;;  %v676_v23 = vrot.slane %v675_v1, 4  ;;  %v683_v48 = vrot.slane %v682_v4, 4  ;;  %v398_v36 = vcombine.high %v2084_v13, %v2084_v13 }
 0x23b   :  { %v689_v39 = vsel %vm499_vm4, %v449_v47, -inf  ;;  %v556_v62 = vsel %vm499_vm4, %v372_v31, -inf  ;;  %v2098_v14 = vrot.slane %v450_v32, %v1982_v44  ;;  %v563_v27 = vsel %vm499_vm4, %v380_v26, -inf }
 0x23c   :  { %v671_v63 = vrot.slane %v670_v10, 2  ;;  %v677_v24 = vmax.f32 %v675_v1, %v676_v23  ;;  %v684_v33 = vmax.f32 %v682_v4, %v683_v48  ;;  %v690_v22 = vrot.slane %v689_v39, 4 }
 0x23d   :  { %v557_v34 = vrot.slane %v556_v62, 4  ;;  %v570_v20 = vsel %vm499_vm4, %v379_v29, -inf  ;;  %v564_v45 = vrot.slane %v563_v27, 4  ;;  %v577_v31 = vsel %vm499_vm4, %v381_v21, -inf }
 0x23e   :  { %v672_v19 = vmax.f32 %v670_v10, %v671_v63  ;;  %v678_v47 = vrot.slane %v677_v24, 2  ;;  %v685_v18 = vrot.slane %v684_v33, 2  ;;  %v691_v17 = vmax.f32 %v689_v39, %v690_v22 }
 0x23f   :  { %v558_v12 = vmax.f32 %v556_v62, %v557_v34  ;;  %v571_v61 = vrot.slane %v570_v20, 4  ;;  %v565_v60 = vmax.f32 %v563_v27, %v564_v45  ;;  %v578_v57 = vrot.slane %v577_v31, 4 }
 0x240   :  { %v673_v1 = vrot.slane %v672_v19, 1  ;;  %v679_v4 = vmax.f32 %v677_v24, %v678_v47  ;;  %v686_v23 = vmax.f32 %v684_v33, %v685_v18  ;;  %v692_v48 = vrot.slane %v691_v17, 2 }
 0x241   :  { %v559_v32 = vrot.slane %v558_v12, 2  ;;  %v572_v58 = vmax.f32 %v570_v20, %v571_v61  ;;  %v465_v22 = vcombine.high %v2087_v11, %v2087_v11  ;;  %v566_v10 = vrot.slane %v565_v60, 2 }
 0x242   :  { %v680_v26 = vrot.slane %v679_v4, 1  ;;  %v687_v2 = vrot.slane %v686_v23, 1  ;;  %v2103_v29 = vmax.f32 %v691_v17, %v692_v48  ;;  %v579_v62 = vmax.f32 %v577_v31, %v578_v57 }
 0x243   :  { %v560_v63 = vmax.f32 %v558_v12, %v559_v32  ;;  %v573_v39 = vrot.slane %v572_v58, 2  ;;  %v2107_v21 = vmax.f32 %v672_v19, %v673_v1  ;;  %v466_v45 = vcombine.high %v2098_v14, %v2098_v14 }
 0x244   :  { %v2109_v24 = vmax.f32 %v679_v4, %v680_v26  ;;  %v584_v61 = vsel %vm499_vm4, %v2074_v25, -inf  ;;  %v567_v17 = vmax.f32 %v565_v60, %v566_v10  ;;  %v580_v33 = vrot.slane %v579_v62, 2 }
 0x245   :  { %v561_v18 = vrot.slane %v560_v63, 1  ;;  %v574_v20 = vmax.f32 %v572_v58, %v573_v39  ;;  %v2115_v34 = vmax.f32 %v686_v23, %v687_v2  ;;  %v585_v12 = vrot.slane %v584_v61, 4 }
 0x246   :  { %v591_v27 = vsel %vm499_vm4, %v397_v30, -inf  ;;  %v598_v57 = vsel %vm499_vm4, %v2084_v13, -inf  ;;  %v694_v19 = vrot.slane %v2103_v29, 1  ;;  %v568_v47 = vrot.slane %v567_v17, 1 }
 0x247   :  { %v575_v31 = vrot.slane %v574_v20, 1  ;;  %v581_v1 = vmax.f32 %v579_v62, %v580_v33  ;;  %v586_v4 = vmax.f32 %v584_v61, %v585_v12  ;;  %v592_v48 = vrot.slane %v591_v27, 4 }
 0x248   :  { %v599_v25 = vrot.slane %v598_v57, 4  ;;  %v605_v60 = vsel %vm499_vm4, %v398_v36, -inf  ;;  %v2122_v58 = vmax.f32 %v560_v63, %v561_v18  ;;  %v2124_v2 = vmax.f32 %v567_v17, %v568_v47 }
 0x249   :  { %v2126_v23 = vmax.f32 %v574_v20, %v575_v31  ;;  %v606_v30 = vrot.slane %v605_v60, 4  ;;  %v587_v32 = vrot.slane %v586_v4, 2  ;;  %v593_v26 = vmax.f32 %v591_v27, %v592_v48 }
 0x24a   :  { %v600_v13 = vmax.f32 %v598_v57, %v599_v25  ;;  %v696_v10 = vsel %vm499_vm4, %v2087_v11, -inf  ;;  %v582_v39 = vrot.slane %v581_v1, 1  ;;  %v703_v33 = vsel %vm499_vm4, %v465_v22, -inf }
 0x24b   :  { %v607_v62 = vmax.f32 %v605_v60, %v606_v30  ;;  %v697_v61 = vrot.slane %v696_v10, 4  ;;  %v588_v12 = vmax.f32 %v586_v4, %v587_v32  ;;  %v594_v36 = vrot.slane %v593_v26, 2 }
 0x24c   :  { %v601_v63 = vrot.slane %v600_v13, 2  ;;  %v704_v18 = vrot.slane %v703_v33, 4  ;;  %v710_v20 = vsel %vm499_vm4, %v2098_v14, -inf  ;;  %v717_v27 = vsel %vm499_vm4, %v466_v45, -inf }
 0x24d   :  { %v608_v17 = vrot.slane %v607_v62, 2  ;;  %v698_v47 = vmax.f32 %v696_v10, %v697_v61  ;;  %v589_v57 = vrot.slane %v588_v12, 1  ;;  %v595_v31 = vmax.f32 %v593_v26, %v594_v36 }
 0x24e   :  { %v602_v48 = vmax.f32 %v600_v13, %v601_v63  ;;  %v705_v11 = vmax.f32 %v703_v33, %v704_v18  ;;  %v711_v30 = vrot.slane %v710_v20, 4  ;;  %v718_v56 = vrot.slane %v717_v27, 4 }
 0x24f   :  { %v609_v25 = vmax.f32 %v607_v62, %v608_v17  ;;  %v699_v60 = vrot.slane %v698_v47, 2  ;;  %v2134_v22 = vmax.f32 %v581_v1, %v582_v39  ;;  %v596_v4 = vrot.slane %v595_v31, 1 }
 0x250   :  { %v603_v32 = vrot.slane %v602_v48, 1  ;;  %v706_v8 = vrot.slane %v705_v11, 2  ;;  %v712_v14 = vmax.f32 %v710_v20, %v711_v30  ;;  %v719_v7 = vmax.f32 %v717_v27, %v718_v56 }
 0x251   :  { %v610_v10 = vrot.slane %v609_v25, 1  ;;  %v700_v61 = vmax.f32 %v698_v47, %v699_v60  ;;  %v2136_v45 = vmax.f32 %v588_v12, %v589_v57  ;;  %v2138_v26 = vmax.f32 %v595_v31, %v596_v4 }
 0x252   :  { %v2140_v13 = vmax.f32 %v602_v48, %v603_v32  ;;  %v707_v62 = vmax.f32 %v705_v11, %v706_v8  ;;  %v713_v39 = vrot.slane %v712_v14, 2  ;;  %v720_v36 = vrot.slane %v719_v7, 2 }
 0x253   :  { %v2142_v33 = vmax.f32 %v609_v25, %v610_v10  ;;  %v701_v1 = vrot.slane %v700_v61, 1  ;;  %v2145_v63 = vmax.f32 %v2103_v29, %v694_v19  ;;  %v772_v56 = vmul.f32 %v1975_v35, %v2122_v58 }
 0x254   :  { %v708_v18 = vrot.slane %v707_v62, 1  ;;  %v773_v12 = vmul.f32 %v741_v49, %v2124_v2  ;;  %v714_v8 = vmax.f32 %v712_v14, %v713_v39  ;;  %v721_v47 = vmax.f32 %v719_v7, %v720_v36 }
 0x255   :  { %v2152_v17 = vmax.f32 %v700_v61, %v701_v1  ;;  %v774_v20 = vmul.f32 %v742_v50, %v2126_v23  ;;  %v775_v29 = vmul.f32 %v743_v51, %v2134_v22  ;;  %v776_v19 = vmul.f32 %v744_v52, %v2136_v45 }
 0x256   :  { %v2157_v27 = vmax.f32 %v707_v62, %v708_v18  ;;  %v777_v57 = vmul.f32 %v745_v53, %v2138_v26  ;;  %v715_v31 = vrot.slane %v714_v8, 1  ;;  %v722_v7 = vrot.slane %v721_v47, 1 }
 0x257   :  { %v778_v48 = vmul.f32 %v746_v54, %v2140_v13  ;;  %v2174_v11 = vmul.f32 %v747_v55, %v2142_v33  ;;  %v789_v25 = vmul.f32 %v741_v49, %v2109_v24  ;;  %v790_v60 = vmul.f32 %v742_v50, %v2115_v34 }
 0x258   :  { %v791_v30 = vmul.f32 %v743_v51, %v2145_v63  ;;  %v792_v4 = vmul.f32 %v744_v52, %v2152_v17  ;;  %v2188_v32 = vmax.f32 %v714_v8, %v715_v31  ;;  %v2190_v10 = vmax.f32 %v721_v47, %v722_v7 }
 0x259   :  { %3006 = vst [vmem:[#allocation12_spill] sm:$0xff] %v2174_v11  ;;  %v849_v61 = vrot.slane %v773_v12, 7  ;;  %v851_v14 = vrot.slane %v774_v20, 6  ;;  %v788_v49 = vmul.f32 %v1975_v35, %v2107_v21  ;;  %v793_v50 = vmul.f32 %v745_v53, %v2157_v27 }
 0x25a   :  { %v853_v62 = vrot.slane %v775_v29, 5  ;;  %v855_v1 = vrot.slane %v776_v19, 4  ;;  %v794_v51 = vmul.f32 %v746_v54, %v2188_v32  ;;  %v857_v39 = vrot.slane %v777_v57, 3 }
 0x25b   :  { %v850_v52 = vsel %vm829_vm5, %v849_v61, %v772_v56  ;;  %v859_v36 = vrot.slane %v778_v48, 2  ;;  %v877_v12 = vrot.slane %v789_v25, 7  ;;  %v879_v8 = vrot.slane %v790_v60, 6 }
 0x25c   :  { %v852_v18 = vsel %vm832_vm6, %v851_v14, %v850_v52  ;;  %v881_v47 = vrot.slane %v791_v30, 5  ;;  %v2205_v20 = vmul.f32 %v747_v55, %v2190_v10  ;;  %v883_v19 = vrot.slane %v792_v4, 4 }
 0x25d   :  { %v854_v53 = vsel %vm835_vm7, %v853_v62, %v852_v18  ;;  %v878_v56 = vsel %vm829_vm5, %v877_v12, %v788_v49  ;;  %v885_v57 = vrot.slane %v793_v50, 3  ;;  %v331_v31 = vcombine.high %v2066_v9, %v2066_v9 }
 0x25e   :  { %3007 = vst [vmem:[#allocation13_spill] sm:$0xff] %v2205_v20  ;;  %v856_v54 = vsel %vm838_vm8, %v855_v1, %v854_v53  ;;  %v880_v7 = vsel %vm832_vm6, %v879_v8, %v878_v56  ;;  %v887_v48 = vrot.slane %v794_v51, 2  ;;  %v338_v35 = vrot.slane %v2066_v9, %v1982_v44 }
 0x25f   :  { %v348_v55 = vcombine.high %v2068_v0, %v2068_v0  ;;  %v858_v25 = vsel %vm841_vm9, %v857_v39, %v856_v54  ;;  %v882_v60 = vsel %vm835_vm7, %v881_v47, %v880_v7  ;;  %v345_v30 = vrot.slane %v331_v31, %v1982_v44 }
 0x260   :  { %v355_v4 = vrot.slane %v2068_v0, %v1982_v44  ;;  %v884_v61 = vsel %vm838_vm8, %v883_v19, %v882_v60  ;;  %v346_v14 = vcombine.high %v338_v35, %v338_v35  ;;  %v399_v9 = vcombine.high %v2076_v15, %v2076_v15 }
 0x261   :  { %v362_v49 = vrot.slane %v348_v55, %v1982_v44  ;;  %v886_v50 = vsel %vm841_vm9, %v885_v57, %v884_v61  ;;  %v347_v1 = vcombine.high %v345_v30, %v345_v30  ;;  %v406_v51 = vrot.slane %v2076_v15, %v1982_v44 }
 0x262   :  { %v2232_v52 = vsel %vm844_vm10, %v859_v36, %v858_v25  ;;  %v363_v0 = vcombine.high %v355_v4, %v355_v4  ;;  %v2235_v39 = vrot.slane %v399_v9, %v1982_v44  ;;  %v416_v18 = vcombine.high %v2078_v28, %v2078_v28 }
 0x263   :  { %3008 = vst [vmem:[#allocation14_spill] sm:$0xff] %v2232_v52  ;;  %v2240_v12 = vsel %vm844_vm10, %v887_v48, %v886_v50  ;;  %v364_v8 = vcombine.high %v362_v49, %v362_v49  ;;  %v500_v47 = vsel %vm499_vm4, %v338_v35, -inf  ;;  %v507_v53 = vsel %vm499_vm4, %v346_v14, -inf }
 0x264   :  { %3009 = vst [vmem:[#allocation15_spill] sm:$0xff] %v2240_v12  ;;  %v414_v19 = vcombine.high %v406_v51, %v406_v51  ;;  %v2246_v15 = vrot.slane %v2078_v28, %v1982_v44  ;;  %v501_v36 = vrot.slane %v500_v47, 4  ;;  %v508_v54 = vrot.slane %v507_v53, 4 }
 0x265   :  { %v415_v56 = vcombine.high %v2235_v39, %v2235_v39  ;;  %v514_v57 = vsel %vm499_vm4, %v345_v30, -inf  ;;  %v521_v31 = vsel %vm499_vm4, %v347_v1, -inf  ;;  %v528_v7 = vsel %vm499_vm4, %v355_v4, -inf }
 0x266   :  { %v2254_v48 = vrot.slane %v416_v18, %v1982_v44  ;;  %v502_v35 = vmax.f32 %v500_v47, %v501_v36  ;;  %v509_v55 = vmax.f32 %v507_v53, %v508_v54  ;;  %v515_v25 = vrot.slane %v514_v57, 4 }
 0x267   :  { %v522_v60 = vrot.slane %v521_v31, 4  ;;  %v529_v28 = vrot.slane %v528_v7, 4  ;;  %v535_v61 = vsel %vm499_vm4, %v363_v0, -inf  ;;  %v542_v14 = vsel %vm499_vm4, %v362_v49, -inf }
 0x268   :  { %v503_v9 = vrot.slane %v502_v35, 2  ;;  %v510_v50 = vrot.slane %v509_v55, 2  ;;  %v516_v62 = vmax.f32 %v514_v57, %v515_v25  ;;  %v536_v30 = vrot.slane %v535_v61, 4 }
 0x269   :  { %v523_v29 = vmax.f32 %v521_v31, %v522_v60  ;;  %v530_v1 = vmax.f32 %v528_v7, %v529_v28  ;;  %v543_v5 = vrot.slane %v542_v14, 4  ;;  %v549_v4 = vsel %vm499_vm4, %v364_v8, -inf }
 0x26a   :  { %v504_v44 = vmax.f32 %v502_v35, %v503_v9  ;;  %v511_v18 = vmax.f32 %v509_v55, %v510_v50  ;;  %v517_v47 = vrot.slane %v516_v62, 2  ;;  %v537_v53 = vmax.f32 %v535_v61, %v536_v30 }
 0x26b   :  { %v524_v36 = vrot.slane %v523_v29, 2  ;;  %v531_v54 = vrot.slane %v530_v1, 2  ;;  %v544_v3 = vmax.f32 %v542_v14, %v543_v5  ;;  %v550_v46 = vrot.slane %v549_v4, 4 }
 0x26c   :  { %v505_v0 = vrot.slane %v504_v44, 1  ;;  %v512_v38 = vrot.slane %v511_v18, 1  ;;  %v518_v49 = vmax.f32 %v516_v62, %v517_v47  ;;  %v538_v59 = vrot.slane %v537_v53, 2 }
 0x26d   :  { %v525_v20 = vmax.f32 %v523_v29, %v524_v36  ;;  %v532_v57 = vmax.f32 %v530_v1, %v531_v54  ;;  %v545_v25 = vrot.slane %v544_v3, 2  ;;  %v551_v31 = vmax.f32 %v549_v4, %v550_v46 }
 0x26e   :  { %v431_v7 = vcombine.high %v2246_v15, %v2246_v15  ;;  %v432_v8 = vcombine.high %v2254_v48, %v2254_v48  ;;  %v519_v35 = vrot.slane %v518_v49, 1  ;;  %v539_v55 = vmax.f32 %v537_v53, %v538_v59 }
 0x26f   :  { %v526_v60 = vrot.slane %v525_v20, 1  ;;  %v533_v28 = vrot.slane %v532_v57, 1  ;;  %v546_v5 = vmax.f32 %v544_v3, %v545_v25  ;;  %v552_v61 = vrot.slane %v551_v31, 2 }
 0x270   :  { %v2263_v14 = vmax.f32 %v504_v44, %v505_v0  ;;  %v540_v62 = vrot.slane %v539_v55, 1  ;;  %v612_v29 = vsel %vm499_vm4, %v406_v51, -inf  ;;  %v619_v9 = vsel %vm499_vm4, %v414_v19, -inf }
 0x271   :  { %v2267_v46 = vmax.f32 %v511_v18, %v512_v38  ;;  %v2269_v50 = vmax.f32 %v518_v49, %v519_v35  ;;  %v2271_v30 = vmax.f32 %v525_v20, %v526_v60  ;;  %v553_v1 = vmax.f32 %v551_v31, %v552_v61 }
 0x272   :  { %v2273_v4 = vmax.f32 %v532_v57, %v533_v28  ;;  %v613_v59 = vrot.slane %v612_v29, 4  ;;  %v620_v47 = vrot.slane %v619_v9, 4  ;;  %v626_v3 = vsel %vm499_vm4, %v2235_v39, -inf }
 0x273   :  { %v2277_v44 = vmax.f32 %v539_v55, %v540_v62  ;;  %v547_v53 = vrot.slane %v546_v5, 1  ;;  %v627_v51 = vrot.slane %v626_v3, 4  ;;  %v633_v19 = vsel %vm499_vm4, %v415_v56, -inf }
 0x274   :  { %v614_v38 = vmax.f32 %v612_v29, %v613_v59  ;;  %v621_v18 = vmax.f32 %v619_v9, %v620_v47  ;;  %v634_v36 = vrot.slane %v633_v19, 4  ;;  %v640_v20 = vsel %vm499_vm4, %v2246_v15, -inf }
 0x275   :  { %v554_v54 = vrot.slane %v553_v1, 1  ;;  %v628_v0 = vmax.f32 %v626_v3, %v627_v51  ;;  %v641_v49 = vrot.slane %v640_v20, 4  ;;  %v647_v57 = vsel %vm499_vm4, %v431_v7, -inf }
 0x276   :  { %v615_v25 = vrot.slane %v614_v38, 2  ;;  %v622_v31 = vrot.slane %v621_v18, 2  ;;  %v635_v39 = vmax.f32 %v633_v19, %v634_v36  ;;  %v648_v35 = vrot.slane %v647_v57, 4 }
 0x277   :  { %v629_v55 = vrot.slane %v628_v0, 2  ;;  %v642_v60 = vmax.f32 %v640_v20, %v641_v49  ;;  %v654_v56 = vsel %vm499_vm4, %v2254_v48, -inf  ;;  %v661_v28 = vsel %vm499_vm4, %v432_v8, -inf }
 0x278   :  { %v616_v61 = vmax.f32 %v614_v38, %v615_v25  ;;  %v623_v62 = vmax.f32 %v621_v18, %v622_v31  ;;  %v636_v29 = vrot.slane %v635_v39, 2  ;;  %v649_v15 = vmax.f32 %v647_v57, %v648_v35 }
 0x279   :  { %v630_v9 = vmax.f32 %v628_v0, %v629_v55  ;;  %v643_v59 = vrot.slane %v642_v60, 2  ;;  %v655_v47 = vrot.slane %v654_v56, 4  ;;  %v662_v3 = vrot.slane %v661_v28, 4 }
 0x27a   :  { %v617_v7 = vrot.slane %v616_v61, 1  ;;  %v624_v51 = vrot.slane %v623_v62, 1  ;;  %v637_v12 = vmax.f32 %v635_v39, %v636_v29  ;;  %v650_v19 = vrot.slane %v649_v15, 2 }
 0x27b   :  { %v631_v36 = vrot.slane %v630_v9, 1  ;;  %v644_v11 = vmax.f32 %v642_v60, %v643_v59  ;;  %v656_v20 = vmax.f32 %v654_v56, %v655_v47  ;;  %v663_v49 = vmax.f32 %v661_v28, %v662_v3 }
 0x27c   :  { %v2286_v52 = vmax.f32 %v546_v5, %v547_v53  ;;  %v2288_v48 = vmax.f32 %v553_v1, %v554_v54  ;;  %v638_v8 = vrot.slane %v637_v12, 1  ;;  %v651_v38 = vmax.f32 %v649_v15, %v650_v19 }
 0x27d   :  { %v2290_v18 = vmax.f32 %v616_v61, %v617_v7  ;;  %v645_v0 = vrot.slane %v644_v11, 1  ;;  %v657_v57 = vrot.slane %v656_v20, 2  ;;  %v664_v25 = vrot.slane %v663_v49, 2 }
 0x27e   :  { %v2292_v31 = vmax.f32 %v623_v62, %v624_v51  ;;  %v2294_v35 = vmax.f32 %v630_v9, %v631_v36  ;;  %v2296_v39 = vmax.f32 %v637_v12, %v638_v8  ;;  %v652_v55 = vrot.slane %v651_v38, 1 }
 0x27f   :  { %v2298_v60 = vmax.f32 %v644_v11, %v645_v0  ;;  %v658_v5 = vmax.f32 %v656_v20, %v657_v57  ;;  %v665_v53 = vmax.f32 %v663_v49, %v664_v25  ;;  %v764_v1 = vmul.f32 %v1977_v40, %v2263_v14 }
 0x280   :  { %v2302_v54 = vmax.f32 %v651_v38, %v652_v55  ;;  %v3010_v56 = vrot.slane %v1977_v40, 1  ;;  %v3011_v61 = vrot.slane %v1977_v40, 2  ;;  %v3012_v12 = vrot.slane %v1977_v40, 3 }
 0x281   :  { %v659_v29 = vrot.slane %v658_v5, 1  ;;  %v666_v15 = vrot.slane %v665_v53, 1  ;;  %v3013_v9 = vrot.slane %v1977_v40, 4  ;;  %v3014_v47 = vrot.slane %v1977_v40, 5 }
 0x282   :  { %v765_v28 = vmul.f32 %v3010_v56, %v2267_v46  ;;  %v766_v62 = vmul.f32 %v3011_v61, %v2269_v50  ;;  %v767_v11 = vmul.f32 %v3012_v12, %v2271_v30  ;;  %v3015_v7 = vrot.slane %v1977_v40, 6 }
 0x283   :  { %v768_v59 = vmul.f32 %v3013_v9, %v2273_v4  ;;  %v769_v3 = vmul.f32 %v3014_v47, %v2277_v44  ;;  %v3016_v19 = vrot.slane %v1977_v40, 7  ;;  %v3018_v20 = vmov %v3010_v56 }
 0x284   :  { %v770_v51 = vmul.f32 %v3015_v7, %v2286_v52  ;;  %v781_v49 = vmul.f32 %v3018_v20, %v2292_v31  ;;  %v3019_v8 = vmov %v3011_v61  ;;  %v2333_v0 = vmax.f32 %v658_v5, %v659_v29 }
 0x285   :  { %v2325_v36 = vmul.f32 %v3016_v19, %v2288_v48  ;;  %v782_v38 = vmul.f32 %v3019_v8, %v2294_v35  ;;  %v2335_v57 = vmax.f32 %v665_v53, %v666_v15  ;;  %v3020_v25 = vmov %v3012_v12 }
 0x286   :  { %v783_v55 = vmul.f32 %v3020_v25, %v2296_v39  ;;  %v3021_v56 = vmov %v3013_v9  ;;  %v3022_v12 = vmov %v3014_v47  ;;  %v828_v47 = vrot.slane %v765_v28, 7 }
 0x287   :  { %3017 = vst [vmem:[#allocation16_spill] sm:$0xff] %v2325_v36  ;;  %v784_v61 = vmul.f32 %v3021_v56, %v2298_v60  ;;  %v785_v9 = vmul.f32 %v3022_v12, %v2302_v54  ;;  %v831_v7 = vrot.slane %v766_v62, 6  ;;  %v834_v19 = vrot.slane %v767_v11, 5 }
 0x288   :  { %v780_v5 = vmul.f32 %v1977_v40, %v2290_v18  ;;  %v3023_v53 = vrot.slane %v1977_v40, 6  ;;  %v3024_v15 = vrot.slane %v1977_v40, 7  ;;  %v837_v8 = vrot.slane %v768_v59, 4 }
 0x289   :  { %v830_v25 = vsel %vm829_vm5, %v828_v47, %v764_v1  ;;  %v840_v56 = vrot.slane %v769_v3, 3  ;;  %v863_v12 = vrot.slane %v781_v49, 7  ;;  %v865_v28 = vrot.slane %v782_v38, 6 }
 0x28a   :  { %v786_v29 = vmul.f32 %v3023_v53, %v2333_v0  ;;  %v2354_v20 = vmul.f32 %v3024_v15, %v2335_v57  ;;  %v833_v62 = vsel %vm832_vm6, %v831_v7, %v830_v25  ;;  %v843_v11 = vrot.slane %v770_v51, 2 }
 0x28b   :  { %v867_v42 = vrot.slane %v783_v55, 5  ;;  %v836_v16 = vsel %vm835_vm7, %v834_v19, %v833_v62  ;;  %v864_v53 = vsel %vm829_vm5, %v863_v12, %v780_v5  ;;  %v869_v6 = vrot.slane %v784_v61, 4 }
 0x28c   :  { %3025 = vst [vmem:[#allocation17_spill] sm:$0xff] %v2354_v20  ;;  %v871_v40 = vrot.slane %v785_v9, 3  ;;  %v839_v15 = vsel %vm838_vm8, %v837_v8, %v836_v16  ;;  %v866_v59 = vsel %vm832_vm6, %v865_v28, %v864_v53  ;;  %v873_v1 = vrot.slane %v786_v29, 2 }
 0x28d   :  { %v842_v49 = vsel %vm841_vm9, %v840_v56, %v839_v15  ;;  %v868_v51 = vsel %vm835_vm7, %v867_v42, %v866_v59  ;;  %v964_v38 = vmul.f32 %v1979_v43, %v2263_v14  ;;  %v3026_v55 = vrot.slane %v1979_v43, 1 }
 0x28e   :  { %v2372_v61 = vsel %vm844_vm10, %v843_v11, %v842_v49  ;;  %v870_v16 = vsel %vm838_vm8, %v869_v6, %v868_v51  ;;  %v3027_v9 = vrot.slane %v1979_v43, 2  ;;  %v3028_v19 = vrot.slane %v1979_v43, 3 }
 0x28f   :  { %v965_v47 = vmul.f32 %v3026_v55, %v2267_v46  ;;  %v872_v5 = vsel %vm841_vm9, %v871_v40, %v870_v16  ;;  %v3029_v29 = vrot.slane %v1979_v43, 4  ;;  %v3030_v25 = vrot.slane %v1979_v43, 5 }
 0x290   :  { %v966_v7 = vmul.f32 %v3027_v9, %v2269_v50  ;;  %v967_v42 = vmul.f32 %v3028_v19, %v2271_v30  ;;  %v3031_v6 = vrot.slane %v1979_v43, 6  ;;  %v3032_v28 = vrot.slane %v1979_v43, 7 }
 0x291   :  { %v968_v8 = vmul.f32 %v3029_v29, %v2273_v4  ;;  %v969_v56 = vmul.f32 %v3030_v25, %v2277_v44  ;;  %v3034_v11 = vmov %v3026_v55  ;;  %v3035_v40 = vmov %v3027_v9 }
 0x292   :  { %v970_v12 = vmul.f32 %v3031_v6, %v2286_v52  ;;  %v2394_v62 = vmul.f32 %v3032_v28, %v2288_v48  ;;  %v981_v53 = vmul.f32 %v3034_v11, %v2292_v31  ;;  %v982_v15 = vmul.f32 %v3035_v40, %v2294_v35 }
 0x293   :  { %v3036_v59 = vmov %v3028_v19  ;;  %v2406_v51 = vsel %vm844_vm10, %v873_v1, %v872_v5  ;;  %v980_v55 = vmul.f32 %v1979_v43, %v2290_v18  ;;  %v3038_v16 = vmov %v3029_v29 }
 0x294   :  { %3033 = vst [vmem:[#allocation18_spill] sm:$0xff] %v2394_v62  ;;  %v983_v49 = vmul.f32 %v3036_v59, %v2296_v39  ;;  %3037 = vst [vmem:[#allocation19_spill] sm:$0xff] %v2406_v51  ;;  %v984_v9 = vmul.f32 %v3038_v16, %v2298_v60  ;;  %v3039_v19 = vmov %v3030_v25  ;;  %v3040_v25 = vmov %v3031_v6 }
 0x295   :  { %v985_v29 = vmul.f32 %v3039_v19, %v2302_v54  ;;  %v986_v6 = vmul.f32 %v3040_v25, %v2333_v0  ;;  %v1028_v28 = vrot.slane %v965_v47, 7  ;;  %v1030_v11 = vrot.slane %v966_v7, 6 }
 0x296   :  { %v1032_v40 = vrot.slane %v967_v42, 5  ;;  %v3041_v1 = vrot.slane %v1979_v43, 7  ;;  %v1034_v59 = vrot.slane %v968_v8, 4  ;;  %v1036_v3 = vrot.slane %v969_v56, 3 }
 0x297   :  { %v1056_v41 = vrot.slane %v981_v53, 7  ;;  %v1029_v16 = vsel %vm829_vm5, %v1028_v28, %v964_v38  ;;  %v1038_v20 = vrot.slane %v970_v12, 2  ;;  %v1058_v51 = vrot.slane %v982_v15, 6 }
 0x298   :  { %v2422_v5 = vmul.f32 %v3041_v1, %v2335_v57  ;;  %v1060_v19 = vrot.slane %v983_v49, 5  ;;  %v1031_v36 = vsel %vm832_vm6, %v1030_v11, %v1029_v16  ;;  %v1062_v7 = vrot.slane %v984_v9, 4 }
 0x299   :  { %v1057_v47 = vsel %vm829_vm5, %v1056_v41, %v980_v55  ;;  %v1033_v42 = vsel %vm835_vm7, %v1032_v40, %v1031_v36  ;;  %v1064_v1 = vrot.slane %v985_v29, 3  ;;  %v1066_v8 = vrot.slane %v986_v6, 2 }
 0x29a   :  { %3042 = vst [vmem:[#allocation20_spill] sm:$0xff] %v2422_v5  ;;  %v1059_v43 = vsel %vm832_vm6, %v1058_v51, %v1057_v47  ;;  %v1035_v56 = vsel %vm838_vm8, %v1034_v59, %v1033_v42  ;;  %v972_v53 = vmul.f32 %v1987_v37, %v2122_v58  ;;  %v3043_v36 = vrot.slane %v1987_v37, 1 }
 0x29b   :  { %v1061_v38 = vsel %vm835_vm7, %v1060_v19, %v1059_v43  ;;  %v1037_v15 = vsel %vm841_vm9, %v1036_v3, %v1035_v56  ;;  %v3044_v51 = vrot.slane %v1987_v37, 2  ;;  %v3046_v6 = vrot.slane %v1987_v37, 3 }
 0x29c   :  { %v1063_v41 = vsel %vm838_vm8, %v1062_v7, %v1061_v38  ;;  %v973_v49 = vmul.f32 %v3043_v36, %v2124_v2  ;;  %v2444_v9 = vsel %vm844_vm10, %v1038_v20, %v1037_v15  ;;  %v3047_v3 = vrot.slane %v1987_v37, 4 }
 0x29d   :  { %v974_v55 = vmul.f32 %v3044_v51, %v2126_v23  ;;  %3045 = vst [vmem:[#allocation21_spill] sm:$0xff] %v2444_v9  ;;  %v1065_v29 = vsel %vm841_vm9, %v1064_v1, %v1063_v41  ;;  %v975_v28 = vmul.f32 %v3046_v6, %v2134_v22  ;;  %v3049_v59 = vrot.slane %v1987_v37, 5 }
 0x29e   :  { %v976_v11 = vmul.f32 %v3047_v3, %v2136_v45  ;;  %v2454_v40 = vsel %vm844_vm10, %v1066_v8, %v1065_v29  ;;  %v3050_v20 = vrot.slane %v1987_v37, 6  ;;  %v3051_v47 = vmov %v3043_v36 }
 0x29f   :  { %3048 = vst [vmem:[#allocation22_spill] sm:$0xff] %v2454_v40  ;;  %v977_v16 = vmul.f32 %v3049_v59, %v2138_v26  ;;  %v989_v7 = vmul.f32 %v3051_v47, %v2109_v24  ;;  %v3052_v42 = vrot.slane %v1987_v37, 7  ;;  %v988_v1 = vmul.f32 %v1987_v37, %v2107_v21 }
 0x2a0   :  { %v978_v19 = vmul.f32 %v3050_v20, %v2140_v13  ;;  %v3054_v8 = vmov %v3044_v51  ;;  %v3055_v38 = vmov %v3046_v6  ;;  %v3056_v41 = vmov %v3047_v3 }
 0x2a1   :  { %v2468_v43 = vmul.f32 %v3052_v42, %v2142_v33  ;;  %v990_v56 = vmul.f32 %v3054_v8, %v2115_v34  ;;  %v991_v15 = vmul.f32 %v3055_v38, %v2145_v63  ;;  %v992_v36 = vmul.f32 %v3056_v41, %v2152_v17 }
 0x2a2   :  { %v3057_v51 = vmov %v3049_v59  ;;  %v1042_v6 = vrot.slane %v973_v49, 7  ;;  %v1044_v3 = vrot.slane %v974_v55, 6  ;;  %v3058_v59 = vmov %v3050_v20 }
 0x2a3   :  { %3053 = vst [vmem:[#allocation23_spill] sm:$0xff] %v2468_v43  ;;  %v993_v29 = vmul.f32 %v3057_v51, %v2157_v27  ;;  %v994_v20 = vmul.f32 %v3058_v59, %v2188_v32  ;;  %v3059_v47 = vmov %v3052_v42  ;;  %v1046_v8 = vrot.slane %v975_v28, 5 }
 0x2a4   :  { %v2490_v42 = vmul.f32 %v3059_v47, %v2190_v10  ;;  %v1048_v38 = vrot.slane %v976_v11, 4  ;;  %v1043_v12 = vsel %vm829_vm5, %v1042_v6, %v972_v53  ;;  %v1050_v41 = vrot.slane %v977_v16, 3 }
 0x2a5   :  { %v1070_v25 = vrot.slane %v989_v7, 7  ;;  %v1072_v5 = vrot.slane %v990_v56, 6  ;;  %v1045_v51 = vsel %vm832_vm6, %v1044_v3, %v1043_v12  ;;  %v1052_v49 = vrot.slane %v978_v19, 2  ;;  %v3061_v19 = vld [vmem:[#allocation8_spill] sm:$0xff] }
 0x2a6   :  { %3060 = vst [vmem:[#allocation24_spill] sm:$0xff] %v2490_v42  ;;  %v1074_v40 = vrot.slane %v991_v15, 5  ;;  %v1047_v59 = vsel %vm835_vm7, %v1046_v8, %v1045_v51  ;;  %v1076_v37 = vrot.slane %v992_v36, 4  ;;  %v1078_v47 = vrot.slane %v993_v29, 3 }
 0x2a7   :  { %v1071_v62 = vsel %vm829_vm5, %v1070_v25, %v988_v1  ;;  %v1049_v28 = vsel %vm838_vm8, %v1048_v38, %v1047_v59  ;;  %v1080_v53 = vrot.slane %v994_v20, 2  ;;  %v1158_v56 = vmul.f32 %v3061_v19, %v2263_v14 }
 0x2a8   :  { %v1073_v11 = vsel %vm832_vm6, %v1072_v5, %v1071_v62  ;;  %v1051_v7 = vsel %vm841_vm9, %v1050_v41, %v1049_v28  ;;  %v3062_v15 = vrot.slane %v3061_v19, 1  ;;  %v3064_v62 = vrot.slane %v3061_v19, 2 }
 0x2a9   :  { %v1075_v12 = vsel %vm835_vm7, %v1074_v40, %v1073_v11  ;;  %v2508_v1 = vsel %vm844_vm10, %v1052_v49, %v1051_v7  ;;  %v3065_v29 = vrot.slane %v3061_v19, 3  ;;  %v3066_v3 = vrot.slane %v3061_v19, 4 }
 0x2aa   :  { %v1159_v25 = vmul.f32 %v3062_v15, %v2267_v46  ;;  %3063 = vst [vmem:[#allocation8_spill] sm:$0xff] %v2508_v1  ;;  %v1077_v36 = vsel %vm838_vm8, %v1076_v37, %v1075_v12  ;;  %v1160_v5 = vmul.f32 %v3064_v62, %v2269_v50  ;;  %v3067_v8 = vrot.slane %v3061_v19, 5 }
 0x2ab   :  { %v1161_v40 = vmul.f32 %v3065_v29, %v2271_v30  ;;  %v1079_v6 = vsel %vm841_vm9, %v1078_v47, %v1077_v36  ;;  %v1162_v20 = vmul.f32 %v3066_v3, %v2273_v4  ;;  %v3068_v41 = vrot.slane %v3061_v19, 6 }
 0x2ac   :  { %v1163_v38 = vmul.f32 %v3067_v8, %v2277_v44  ;;  %v3069_v49 = vrot.slane %v3061_v19, 7  ;;  %v3071_v37 = vmov %v3062_v15  ;;  %v3072_v28 = vmov %v3064_v62 }
 0x2ad   :  { %v1164_v51 = vmul.f32 %v3068_v41, %v2286_v52  ;;  %v1175_v47 = vmul.f32 %v3071_v37, %v2292_v31  ;;  %v1176_v11 = vmul.f32 %v3072_v28, %v2294_v35  ;;  %v3073_v7 = vmov %v3065_v29 }
 0x2ae   :  { %v2530_v59 = vmul.f32 %v3069_v49, %v2288_v48  ;;  %v1177_v12 = vmul.f32 %v3073_v7, %v2296_v39  ;;  %v2542_v15 = vsel %vm844_vm10, %v1080_v53, %v1079_v6  ;;  %v1174_v36 = vmul.f32 %v3061_v19, %v2290_v18 }
 0x2af   :  { %3074 = vst [vmem:[#allocation26_spill] sm:$0xff] %v2542_v15  ;;  %v3075_v62 = vmov %v3066_v3  ;;  %v3076_v3 = vmov %v3067_v8  ;;  %v1180_v49 = vmul.f32 %v3068_v41, %v2333_v0  ;;  %v1222_v37 = vrot.slane %v1159_v25, 7 }
 0x2b0   :  { %3070 = vst [vmem:[#allocation25_spill] sm:$0xff] %v2530_v59  ;;  %v1178_v29 = vmul.f32 %v3075_v62, %v2298_v60  ;;  %v1179_v8 = vmul.f32 %v3076_v3, %v2302_v54  ;;  %v1224_v28 = vrot.slane %v1160_v5, 6  ;;  %v1226_v7 = vrot.slane %v1161_v40, 5 }
 0x2b1   :  { %v3077_v53 = vrot.slane %v3061_v19, 7  ;;  %v1228_v16 = vrot.slane %v1162_v20, 4  ;;  %v1230_v55 = vrot.slane %v1163_v38, 3  ;;  %v1250_v42 = vrot.slane %v1175_v47, 7  ;;  %v3079_v47 = vld [vmem:[#allocation9_spill] sm:$0xff] }
 0x2b2   :  { %v1223_v62 = vsel %vm829_vm5, %v1222_v37, %v1158_v56  ;;  %v1232_v15 = vrot.slane %v1164_v51, 2  ;;  %v1252_v43 = vrot.slane %v1176_v11, 6  ;;  %v1254_v3 = vrot.slane %v1177_v12, 5 }
 0x2b3   :  { %v2558_v6 = vmul.f32 %v3077_v53, %v2335_v57  ;;  %v1225_v1 = vsel %vm832_vm6, %v1224_v28, %v1223_v62  ;;  %v1251_v25 = vsel %vm829_vm5, %v1250_v42, %v1174_v36  ;;  %v1256_v5 = vrot.slane %v1178_v29, 4 }
 0x2b4   :  { %v1227_v40 = vsel %vm835_vm7, %v1226_v7, %v1225_v1  ;;  %v1253_v19 = vsel %vm832_vm6, %v1252_v43, %v1251_v25  ;;  %v1258_v53 = vrot.slane %v1179_v8, 3  ;;  %v1260_v20 = vrot.slane %v1180_v49, 2 }
 0x2b5   :  { %3078 = vst [vmem:[#allocation27_spill] sm:$0xff] %v2558_v6  ;;  %v1229_v38 = vsel %vm838_vm8, %v1228_v16, %v1227_v40  ;;  %v1255_v56 = vsel %vm835_vm7, %v1254_v3, %v1253_v19  ;;  %v1166_v11 = vmul.f32 %v3079_v47, %v2122_v58  ;;  %v3080_v1 = vrot.slane %v3079_v47, 1 }
 0x2b6   :  { %v1231_v12 = vsel %vm841_vm9, %v1230_v55, %v1229_v38  ;;  %v1257_v42 = vsel %vm838_vm8, %v1256_v5, %v1255_v56  ;;  %v3081_v43 = vrot.slane %v3079_v47, 2  ;;  %v3083_v49 = vrot.slane %v3079_v47, 3 }
 0x2b7   :  { %v1167_v36 = vmul.f32 %v3080_v1, %v2124_v2  ;;  %v2580_v16 = vsel %vm844_vm10, %v1232_v15, %v1231_v12  ;;  %v1259_v8 = vsel %vm841_vm9, %v1258_v53, %v1257_v42  ;;  %v3084_v55 = vrot.slane %v3079_v47, 4 }
 0x2b8   :  { %v1168_v29 = vmul.f32 %v3081_v43, %v2126_v23  ;;  %3082 = vst [vmem:[#allocation9_spill] sm:$0xff] %v2580_v16  ;;  %v1169_v37 = vmul.f32 %v3083_v49, %v2134_v22  ;;  %v2590_v7 = vsel %vm844_vm10, %v1260_v20, %v1259_v8  ;;  %v3086_v62 = vrot.slane %v3079_v47, 5 }
 0x2b9   :  { %v1170_v28 = vmul.f32 %v3084_v55, %v2136_v45  ;;  %3085 = vst [vmem:[#allocation28_spill] sm:$0xff] %v2590_v7  ;;  %v3087_v15 = vrot.slane %v3079_v47, 6  ;;  %v3088_v5 = vmov %v3080_v1  ;;  %v3089_v19 = vrot.slane %v3079_v47, 7 }
 0x2ba   :  { %v1171_v3 = vmul.f32 %v3086_v62, %v2138_v26  ;;  %v1183_v40 = vmul.f32 %v3088_v5, %v2109_v24  ;;  %v1182_v20 = vmul.f32 %v3079_v47, %v2107_v21  ;;  %v3091_v38 = vmov %v3081_v43 }
 0x2bb   :  { %v1172_v25 = vmul.f32 %v3087_v15, %v2140_v13  ;;  %v2604_v53 = vmul.f32 %v3089_v19, %v2142_v33  ;;  %v1184_v56 = vmul.f32 %v3091_v38, %v2115_v34  ;;  %v3092_v12 = vmov %v3083_v49 }
 0x2bc   :  { %v1185_v42 = vmul.f32 %v3092_v12, %v2145_v63  ;;  %v3093_v1 = vmov %v3084_v55  ;;  %v3094_v8 = vmov %v3086_v62  ;;  %v1236_v55 = vrot.slane %v1167_v36, 7 }
 0x2bd   :  { %3090 = vst [vmem:[#allocation29_spill] sm:$0xff] %v2604_v53  ;;  %v1186_v43 = vmul.f32 %v3093_v1, %v2152_v17  ;;  %v1187_v49 = vmul.f32 %v3094_v8, %v2157_v27  ;;  %v1238_v62 = vrot.slane %v1168_v29, 6  ;;  %v1188_v5 = vmul.f32 %v3087_v15, %v2188_v32 }
 0x2be   :  { %v2626_v38 = vmul.f32 %v3089_v19, %v2190_v10  ;;  %v1240_v12 = vrot.slane %v1169_v37, 5  ;;  %v1242_v51 = vrot.slane %v1170_v28, 4  ;;  %v1237_v41 = vsel %vm829_vm5, %v1236_v55, %v1166_v11 }
 0x2bf   :  { %v1244_v1 = vrot.slane %v1171_v3, 3  ;;  %v1264_v6 = vrot.slane %v1183_v40, 7  ;;  %v1266_v7 = vrot.slane %v1184_v56, 6  ;;  %v1239_v8 = vsel %vm832_vm6, %v1238_v62, %v1237_v41 }
 0x2c0   :  { %3095 = vst [vmem:[#allocation30_spill] sm:$0xff] %v2626_v38  ;;  %v1246_v36 = vrot.slane %v1172_v25, 2  ;;  %v1268_v59 = vrot.slane %v1185_v42, 5  ;;  %v1241_v15 = vsel %vm835_vm7, %v1240_v12, %v1239_v8  ;;  %v1270_v47 = vrot.slane %v1186_v43, 4  ;;  %v3096_v25 = vld [vmem:[#allocation10_spill] sm:$0xff] }
 0x2c1   :  { %v1265_v16 = vsel %vm829_vm5, %v1264_v6, %v1182_v20  ;;  %v1272_v19 = vrot.slane %v1187_v49, 3  ;;  %v1243_v37 = vsel %vm838_vm8, %v1242_v51, %v1241_v15  ;;  %v1274_v11 = vrot.slane %v1188_v5, 2 }
 0x2c2   :  { %v1267_v28 = vsel %vm832_vm6, %v1266_v7, %v1265_v16  ;;  %v1245_v40 = vsel %vm841_vm9, %v1244_v1, %v1243_v37  ;;  %v1352_v56 = vmul.f32 %v3096_v25, %v2263_v14  ;;  %v3097_v42 = vrot.slane %v3096_v25, 1 }
 0x2c3   :  { %v1269_v41 = vsel %vm835_vm7, %v1268_v59, %v1267_v28  ;;  %v2644_v20 = vsel %vm844_vm10, %v1246_v36, %v1245_v40  ;;  %v3099_v16 = vrot.slane %v3096_v25, 2  ;;  %v3100_v43 = vrot.slane %v3096_v25, 3 }
 0x2c4   :  { %v1353_v6 = vmul.f32 %v3097_v42, %v2267_v46  ;;  %3098 = vst [vmem:[#allocation10_spill] sm:$0xff] %v2644_v20  ;;  %v1271_v51 = vsel %vm838_vm8, %v1270_v47, %v1269_v41  ;;  %v3101_v55 = vrot.slane %v3096_v25, 4  ;;  %v3102_v5 = vrot.slane %v3096_v25, 5 }
 0x2c5   :  { %v1354_v7 = vmul.f32 %v3099_v16, %v2269_v50  ;;  %v1355_v59 = vmul.f32 %v3100_v43, %v2271_v30  ;;  %v1273_v49 = vsel %vm841_vm9, %v1272_v19, %v1271_v51  ;;  %v3103_v1 = vrot.slane %v3096_v25, 6 }
 0x2c6   :  { %v1356_v62 = vmul.f32 %v3101_v55, %v2273_v4  ;;  %v1357_v12 = vmul.f32 %v3102_v5, %v2277_v44  ;;  %v3104_v36 = vrot.slane %v3096_v25, 7  ;;  %v3106_v47 = vmov %v3097_v42 }
 0x2c7   :  { %v1358_v8 = vmul.f32 %v3103_v1, %v2286_v52  ;;  %v1369_v19 = vmul.f32 %v3106_v47, %v2292_v31  ;;  %v3107_v37 = vmov %v3099_v16  ;;  %v3108_v40 = vmov %v3100_v43 }
 0x2c8   :  { %v2666_v15 = vmul.f32 %v3104_v36, %v2288_v48  ;;  %v1370_v28 = vmul.f32 %v3107_v37, %v2294_v35  ;;  %v1371_v41 = vmul.f32 %v3108_v40, %v2296_v39  ;;  %v2678_v42 = vsel %vm844_vm10, %v1274_v11, %v1273_v49 }
 0x2c9   :  { %3109 = vst [vmem:[#allocation32_spill] sm:$0xff] %v2678_v42  ;;  %v1368_v51 = vmul.f32 %v3096_v25, %v2290_v18  ;;  %v3110_v16 = vmov %v3101_v55  ;;  %v3111_v55 = vmov %v3102_v5  ;;  %v1374_v36 = vmul.f32 %v3103_v1, %v2333_v0 }
 0x2ca   :  { %3105 = vst [vmem:[#allocation31_spill] sm:$0xff] %v2666_v15  ;;  %v1372_v43 = vmul.f32 %v3110_v16, %v2298_v60  ;;  %v1373_v5 = vmul.f32 %v3111_v55, %v2302_v54  ;;  %v1416_v47 = vrot.slane %v1353_v6, 7  ;;  %v1418_v37 = vrot.slane %v1354_v7, 6 }
 0x2cb   :  { %v1420_v40 = vrot.slane %v1355_v59, 5  ;;  %v3112_v11 = vrot.slane %v3096_v25, 7  ;;  %v1422_v3 = vrot.slane %v1356_v62, 4  ;;  %v1424_v29 = vrot.slane %v1357_v12, 3 }
 0x2cc   :  { %v1444_v38 = vrot.slane %v1369_v19, 7  ;;  %v1417_v16 = vsel %vm829_vm5, %v1416_v47, %v1352_v56  ;;  %v1426_v42 = vrot.slane %v1358_v8, 2  ;;  %v1446_v53 = vrot.slane %v1370_v28, 6  ;;  %v3114_v19 = vld [vmem:[#allocation11_spill] sm:$0xff] }
 0x2cd   :  { %v2694_v49 = vmul.f32 %v3112_v11, %v2335_v57  ;;  %v1448_v55 = vrot.slane %v1371_v41, 5  ;;  %v1419_v20 = vsel %vm832_vm6, %v1418_v37, %v1417_v16  ;;  %v1450_v7 = vrot.slane %v1372_v43, 4 }
 0x2ce   :  { %v1445_v6 = vsel %vm829_vm5, %v1444_v38, %v1368_v51  ;;  %v1421_v59 = vsel %vm835_vm7, %v1420_v40, %v1419_v20  ;;  %v1452_v11 = vrot.slane %v1373_v5, 3  ;;  %v1454_v62 = vrot.slane %v1374_v36, 2 }
 0x2cf   :  { %3113 = vst [vmem:[#allocation33_spill] sm:$0xff] %v2694_v49  ;;  %v1447_v25 = vsel %vm832_vm6, %v1446_v53, %v1445_v6  ;;  %v1423_v12 = vsel %vm838_vm8, %v1422_v3, %v1421_v59  ;;  %v1360_v28 = vmul.f32 %v3114_v19, %v2122_v58  ;;  %v3115_v20 = vrot.slane %v3114_v19, 1 }
 0x2d0   :  { %v1449_v56 = vsel %vm835_vm7, %v1448_v55, %v1447_v25  ;;  %v1425_v41 = vsel %vm841_vm9, %v1424_v29, %v1423_v12  ;;  %v3116_v53 = vrot.slane %v3114_v19, 2  ;;  %v3118_v36 = vrot.slane %v3114_v19, 3 }
 0x2d1   :  { %v1451_v38 = vsel %vm838_vm8, %v1450_v7, %v1449_v56  ;;  %v1361_v51 = vmul.f32 %v3115_v20, %v2124_v2  ;;  %v2716_v3 = vsel %vm844_vm10, %v1426_v42, %v1425_v41  ;;  %v3119_v29 = vrot.slane %v3114_v19, 4 }
 0x2d2   :  { %v1362_v43 = vmul.f32 %v3116_v53, %v2126_v23  ;;  %3117 = vst [vmem:[#allocation11_spill] sm:$0xff] %v2716_v3  ;;  %v1453_v5 = vsel %vm841_vm9, %v1452_v11, %v1451_v38  ;;  %v1363_v47 = vmul.f32 %v3118_v36, %v2134_v22  ;;  %v3121_v16 = vrot.slane %v3114_v19, 5  ;;  %v1511_v3 = vpop.permute.xlu1 %1510 }
 0x2d3   :  { %v1364_v37 = vmul.f32 %v3119_v29, %v2136_v45  ;;  %v2726_v40 = vsel %vm844_vm10, %v1454_v62, %v1453_v5  ;;  %v3122_v42 = vrot.slane %v3114_v19, 6  ;;  %v3123_v7 = vmov %v3115_v20 }
 0x2d4   :  { %3120 = vst [vmem:[#allocation34_spill] sm:$0xff] %v2726_v40  ;;  %v1365_v55 = vmul.f32 %v3121_v16, %v2138_v26  ;;  %v1377_v59 = vmul.f32 %v3123_v7, %v2109_v24  ;;  %v3124_v25 = vrot.slane %v3114_v19, 7  ;;  %v1376_v62 = vmul.f32 %v3114_v19, %v2107_v21 }
 0x2d5   :  { %v1366_v6 = vmul.f32 %v3122_v42, %v2140_v13  ;;  %v3125_v12 = vmov %v3116_v53  ;;  %v3126_v41 = vmov %v3118_v36  ;;  %v3127_v20 = vmov %v3119_v29 }
 0x2d6   :  { %v2740_v11 = vmul.f32 %v3124_v25, %v2142_v33  ;;  %v1378_v56 = vmul.f32 %v3125_v12, %v2115_v34  ;;  %v1379_v38 = vmul.f32 %v3126_v41, %v2145_v63  ;;  %v1380_v53 = vmul.f32 %v3127_v20, %v2152_v17 }
 0x2d7   :  { %v3128_v5 = vmov %v3121_v16  ;;  %v1430_v29 = vrot.slane %v1361_v51, 7  ;;  %v1432_v16 = vrot.slane %v1362_v43, 6  ;;  %v1382_v7 = vmul.f32 %v3122_v42, %v2188_v32 }
 0x2d8   :  { %v1381_v36 = vmul.f32 %v3128_v5, %v2157_v27  ;;  %v2762_v12 = vmul.f32 %v3124_v25, %v2190_v10  ;;  %v1434_v41 = vrot.slane %v1363_v47, 5  ;;  %v1436_v8 = vrot.slane %v1364_v37, 4 }
 0x2d9   :  { %v1431_v1 = vsel %vm829_vm5, %v1430_v29, %v1360_v28  ;;  %v1438_v20 = vrot.slane %v1365_v55, 3  ;;  %v1458_v49 = vrot.slane %v1377_v59, 7  ;;  %v1460_v40 = vrot.slane %v1378_v56, 6 }
 0x2da   :  { %v1433_v5 = vsel %vm832_vm6, %v1432_v16, %v1431_v1  ;;  %v1440_v51 = vrot.slane %v1366_v6, 2  ;;  %v1442_v43 = vrot.slane %v2740_v11, 1  ;;  %v1462_v15 = vrot.slane %v1379_v38, 5 }
 0x2db   :  { %v1435_v42 = vsel %vm835_vm7, %v1434_v41, %v1433_v5  ;;  %v1459_v19 = vsel %vm829_vm5, %v1458_v49, %v1376_v62  ;;  %v1464_v25 = vrot.slane %v1380_v53, 4  ;;  %v1466_v9 = vrot.slane %v1381_v36, 3 }
 0x2dc   :  { %v1437_v47 = vsel %vm838_vm8, %v1436_v8, %v1435_v42  ;;  %v1461_v28 = vsel %vm832_vm6, %v1460_v40, %v1459_v19  ;;  %v1468_v37 = vrot.slane %v1382_v7, 2  ;;  %v1470_v55 = vrot.slane %v2762_v12, 1 }
 0x2dd   :  { %v1439_v1 = vsel %vm841_vm9, %v1438_v20, %v1437_v47  ;;  %v1463_v6 = vsel %vm835_vm7, %v1462_v15, %v1461_v28  ;;  %v1516_v59 = vrot.slane %v1511_v3, 1  ;;  %v1517_v56 = vrot.slane %v1511_v3, 2 }
 0x2de   :  { %v2775_v38 = vsel %vm844_vm10, %v1440_v51, %v1439_v1  ;;  %v1465_v49 = vsel %vm838_vm8, %v1464_v25, %v1463_v6  ;;  %v1518_v62 = vrot.slane %v1511_v3, 3  ;;  %v1519_v53 = vrot.slane %v1511_v3, 4 }
 0x2df   :  { %v1467_v8 = vsel %vm841_vm9, %v1466_v9, %v1465_v49  ;;  %v1520_v36 = vrot.slane %v1511_v3, 5  ;;  %v1521_v40 = vrot.slane %v1511_v3, 6  ;;  %v1522_v29 = vrot.slane %v1511_v3, 7 }
 0x2e0   :  { %v1546_v16 = vmul.f32 %v1511_v3, %v2263_v14  ;;  %v1547_v7 = vmul.f32 %v1516_v59, %v2267_v46  ;;  %v1548_v15 = vmul.f32 %v1517_v56, %v2269_v50  ;;  %v1549_v41 = vmul.f32 %v1518_v62, %v2271_v30 }
 0x2e1   :  { %v2784_v20 = vsel %vm844_vm10, %v1468_v37, %v1467_v8  ;;  %v1550_v5 = vmul.f32 %v1519_v53, %v2273_v4  ;;  %v1551_v51 = vmul.f32 %v1520_v36, %v2277_v44  ;;  %v1552_v9 = vmul.f32 %v1521_v40, %v2286_v52 }
 0x2e2   :  { %v1553_v42 = vmul.f32 %v1522_v29, %v2288_v48  ;;  %v1563_v14 = vmul.f32 %v1516_v59, %v2292_v31  ;;  %v1564_v46 = vmul.f32 %v1517_v56, %v2294_v35  ;;  %v1565_v50 = vmul.f32 %v1518_v62, %v2296_v39 }
 0x2e3   :  { %v1562_v30 = vmul.f32 %v1511_v3, %v2290_v18  ;;  %v1566_v19 = vmul.f32 %v1519_v53, %v2298_v60  ;;  %v1567_v25 = vmul.f32 %v1520_v36, %v2302_v54  ;;  %v1568_v4 = vmul.f32 %v1521_v40, %v2333_v0  ;;  %v1515_v3 = vpop.permute.xlu0 %1514 }
 0x2e4   :  { %v1569_v44 = vmul.f32 %v1522_v29, %v2335_v57  ;;  %v1610_v47 = vrot.slane %v1547_v7, 7  ;;  %v1612_v52 = vrot.slane %v1548_v15, 6  ;;  %v1614_v28 = vrot.slane %v1549_v41, 5 }
 0x2e5   :  { %v1616_v48 = vrot.slane %v1550_v5, 4  ;;  %v1618_v37 = vrot.slane %v1551_v51, 3  ;;  %v1620_v31 = vrot.slane %v1552_v9, 2  ;;  %v1638_v1 = vrot.slane %v1563_v14, 7 }
 0x2e6   :  { %v1611_v35 = vsel %vm829_vm5, %v1610_v47, %v1546_v16  ;;  %v1622_v39 = vrot.slane %v1553_v42, 1  ;;  %v1640_v6 = vrot.slane %v1564_v46, 6  ;;  %v1642_v18 = vrot.slane %v1565_v50, 5 }
 0x2e7   :  { %v1613_v60 = vsel %vm832_vm6, %v1612_v52, %v1611_v35  ;;  %v1639_v54 = vsel %vm829_vm5, %v1638_v1, %v1562_v30  ;;  %v1644_v0 = vrot.slane %v1566_v19, 4  ;;  %v1646_v59 = vrot.slane %v1567_v25, 3 }
 0x2e8   :  { %v1615_v57 = vsel %vm835_vm7, %v1614_v28, %v1613_v60  ;;  %v1641_v56 = vsel %vm832_vm6, %v1640_v6, %v1639_v54  ;;  %v1648_v49 = vrot.slane %v1568_v4, 2  ;;  %v1650_v62 = vrot.slane %v1569_v44, 1 }
 0x2e9   :  { %v1617_v53 = vsel %vm838_vm8, %v1616_v48, %v1615_v57  ;;  %v1643_v8 = vsel %vm835_vm7, %v1642_v18, %v1641_v56  ;;  %v1523_v36 = vrot.slane %v1515_v3, 1  ;;  %v1524_v40 = vrot.slane %v1515_v3, 2 }
 0x2ea   :  { %v1619_v29 = vsel %vm841_vm9, %v1618_v37, %v1617_v53  ;;  %v1645_v16 = vsel %vm838_vm8, %v1644_v0, %v1643_v8  ;;  %v1525_v7 = vrot.slane %v1515_v3, 3  ;;  %v1526_v15 = vrot.slane %v1515_v3, 4  ;;  %v3129_v0 = vld [vmem:[#allocation16_spill] sm:$0xff] }
 0x2eb   :  { %v1621_v41 = vsel %vm844_vm10, %v1620_v31, %v1619_v29  ;;  %v1647_v5 = vsel %vm841_vm9, %v1646_v59, %v1645_v16  ;;  %v1527_v51 = vrot.slane %v1515_v3, 5  ;;  %v1528_v9 = vrot.slane %v1515_v3, 6  ;;  %v3132_v53 = vld [vmem:[#allocation12_spill] sm:$0xff]  ;;  %v3135_v29 = vld [vmem:[#allocation17_spill] sm:$0xff] }
 0x2ec   :  { %v1623_v42 = vsel %vm847_vm11, %v1622_v39, %v1621_v41  ;;  %v1649_v14 = vsel %vm844_vm10, %v1648_v49, %v1647_v5  ;;  %v1529_v46 = vrot.slane %v1515_v3, 7  ;;  %v1554_v50 = vmul.f32 %v1515_v3, %v2122_v58  ;;  %v3137_v5 = vld [vmem:[#allocation15_spill] sm:$0xff] }
 0x2ed   :  { %v1651_v30 = vsel %vm847_vm11, %v1650_v62, %v1649_v14  ;;  %v1555_v19 = vmul.f32 %v1523_v36, %v2124_v2  ;;  %v1556_v25 = vmul.f32 %v1524_v40, %v2126_v23  ;;  %v1557_v4 = vmul.f32 %v1525_v7, %v2134_v22  ;;  %v3131_v62 = vld [vmem:[#allocation14_spill] sm:$0xff] }
 0x2ee   :  { %v1670_v44 = vsel %vm225_vm3, %v1623_v42, 0.0  ;;  %v1558_v47 = vmul.f32 %v1526_v15, %v2136_v45  ;;  %v1559_v52 = vmul.f32 %v1527_v51, %v2138_v26  ;;  %v1560_v28 = vmul.f32 %v1528_v9, %v2140_v13 }
 0x2ef   :  { %v1561_v48 = vmul.f32 %v1529_v46, %v2142_v33  ;;  %v1570_v58 = vmul.f32 %v1515_v3, %v2107_v21  ;;  %v1571_v37 = vmul.f32 %v1523_v36, %v2109_v24  ;;  %v1572_v2 = vmul.f32 %v1524_v40, %v2115_v34  ;;  %v3134_v40 = vld [vmem:[#allocation19_spill] sm:$0xff] }
 0x2f0   :  { %v1573_v23 = vmul.f32 %v1525_v7, %v2145_v63  ;;  %v1574_v22 = vmul.f32 %v1526_v15, %v2152_v17  ;;  %v1575_v31 = vmul.f32 %v1527_v51, %v2157_v27  ;;  %v1576_v45 = vmul.f32 %v1528_v9, %v2188_v32 }
 0x2f1   :  { %v1577_v26 = vmul.f32 %v1529_v46, %v2190_v10  ;;  %v1624_v1 = vrot.slane %v1555_v19, 7  ;;  %v1626_v13 = vrot.slane %v1556_v25, 6  ;;  %v1628_v35 = vrot.slane %v1557_v4, 5 }
 0x2f2   :  { %v1630_v33 = vrot.slane %v1558_v47, 4  ;;  %v1632_v39 = vrot.slane %v1559_v52, 3  ;;  %v1634_v21 = vrot.slane %v1560_v28, 2  ;;  %v1636_v6 = vrot.slane %v1561_v48, 1 }
 0x2f3   :  { %v1625_v24 = vsel %vm829_vm5, %v1624_v1, %v1554_v50  ;;  %v1652_v34 = vrot.slane %v1571_v37, 7  ;;  %v1654_v18 = vrot.slane %v1572_v2, 6  ;;  %v1656_v63 = vrot.slane %v1573_v23, 5 }
 0x2f4   :  { %v1627_v17 = vsel %vm832_vm6, %v1626_v13, %v1625_v24  ;;  %v1658_v27 = vrot.slane %v1574_v22, 4  ;;  %v1660_v32 = vrot.slane %v1575_v31, 3  ;;  %v1662_v3 = vrot.slane %v1576_v45, 2  ;;  %v3140_v31 = vld [vmem:[#allocation21_spill] sm:$0xff]  ;;  %v3141_v45 = vld [vmem:[#allocation18_spill] sm:$0xff]  ;;  %v3147_v24 = vld [vmem:[#allocation20_spill] sm:$0xff] }
 0x2f5   :  { %v1629_v10 = vsel %vm835_vm7, %v1628_v35, %v1627_v17  ;;  %v1653_v60 = vsel %vm829_vm5, %v1652_v34, %v1570_v58  ;;  %v1664_v54 = vrot.slane %v1577_v26, 1  ;;  %v3130_v59 = vrot.slane %v3129_v0, 1 }
 0x2f6   :  { %v1631_v56 = vsel %vm838_vm8, %v1630_v33, %v1629_v10  ;;  %v1655_v49 = vsel %vm832_vm6, %v1654_v18, %v1653_v60  ;;  %v3133_v8 = vrot.slane %v3132_v53, 1  ;;  %v3136_v16 = vrot.slane %v3135_v29, 1  ;;  %v3143_v33 = vld [vmem:[#allocation8_spill] sm:$0xff] }
 0x2f7   :  { %v848_v57 = vsel %vm847_vm11, %v3130_v59, %v2372_v61  ;;  %v1633_v15 = vsel %vm841_vm9, %v1632_v39, %v1631_v56  ;;  %v1657_v41 = vsel %vm835_vm7, %v1656_v63, %v1655_v49  ;;  %v3138_v61 = vld [vmem:[#allocation13_spill] sm:$0xff]  ;;  %v1679_v28 = vsel %vm225_vm3, %v1651_v30, 0.0  ;;  %v3144_v39 = vld [vmem:[#allocation23_spill] sm:$0xff] }
 0x2f8   :  { %v862_v36 = vsel %vm847_vm11, %v3133_v8, %v3131_v62  ;;  %v876_v7 = vsel %vm847_vm11, %v3136_v16, %v3134_v40  ;;  %v3139_v51 = vrot.slane %v3138_v61, 1  ;;  %v895_v42 = vsel %vm225_vm3, %v848_v57, 0.0  ;;  %v3152_v8 = vld [vmem:[#allocation9_spill] sm:$0xff]  ;;  %v3155_v16 = vld [vmem:[#allocation10_spill] sm:$0xff]  ;;  %v3159_v61 = vld [vmem:[#allocation27_spill] sm:$0xff] }
 0x2f9   :  { %v1635_v14 = vsel %vm844_vm10, %v1634_v21, %v1633_v15  ;;  %v1659_v46 = vsel %vm838_vm8, %v1658_v27, %v1657_v41  ;;  %v896_v50 = vsel %vm225_vm3, %v862_v36, 0.0  ;;  %v904_v19 = vsel %vm225_vm3, %v876_v7, 0.0  ;;  %v3149_v27 = vld [vmem:[#allocation26_spill] sm:$0xff]  ;;  %v3153_v36 = vld [vmem:[#allocation25_spill] sm:$0xff] }
 0x2fa   :  { %v890_v9 = vsel %vm847_vm11, %v3139_v51, %v3137_v5  ;;  %v1637_v25 = vsel %vm847_vm11, %v1636_v6, %v1635_v14  ;;  %v1661_v4 = vsel %vm841_vm9, %v1660_v32, %v1659_v46  ;;  %v897_v47 = vadd.f32 %v896_v50, %v895_v42  ;;  %v3146_v6 = vld [vmem:[#allocation22_spill] sm:$0xff]  ;;  %v3150_v32 = vld [vmem:[#allocation24_spill] sm:$0xff]  ;;  %v3156_v7 = vld [vmem:[#allocation29_spill] sm:$0xff] }
 0x2fb   :  { %v905_v52 = vsel %vm225_vm3, %v890_v9, 0.0  ;;  %v1663_v48 = vsel %vm844_vm10, %v1662_v3, %v1661_v4  ;;  %v1671_v58 = vsel %vm225_vm3, %v1637_v25, 0.0  ;;  %v914_v22 = vstv %s2830_s3  ;;  %v3158_v5 = vld [vmem:[#allocation28_spill] sm:$0xff] }
 0x2fc   :  { %v906_v37 = vadd.f32 %v905_v52, %v904_v19  ;;  %v1665_v2 = vsel %vm847_vm11, %v1664_v54, %v1663_v48  ;;  %v898_v23 = vrot.slane %v897_v47, 4  ;;  %v3142_v26 = vrot.slane %v3141_v45, 1  ;;  %v3161_v50 = vld [vmem:[#allocation32_spill] sm:$0xff]  ;;  %v3162_v19 = vld [vmem:[#allocation30_spill] sm:$0xff] }
 0x2fd   :  { %v1680_v13 = vsel %vm225_vm3, %v1665_v2, 0.0  ;;  %v3145_v30 = vrot.slane %v3144_v39, 1  ;;  %v3148_v34 = vrot.slane %v3147_v24, 1  ;;  %v2883_v63 = vadd.f32 %v1671_v58, %v1670_v44 }
 0x2fe   :  { %v1041_v1 = vsel %vm847_vm11, %v3142_v26, %v3140_v31  ;;  %v907_v35 = vrot.slane %v906_v37, 4  ;;  %v899_v17 = vadd.f32 %v898_v23, %v897_v47  ;;  %v3151_v3 = vrot.slane %v3150_v32, 1 }
 0x2ff   :  { %v1055_v21 = vsel %vm847_vm11, %v3145_v30, %v3143_v33  ;;  %v1069_v18 = vsel %vm847_vm11, %v3148_v34, %v3146_v6  ;;  %v1088_v60 = vsel %vm225_vm3, %v1041_v1, 0.0  ;;  %v2893_v56 = vadd.f32 %v1680_v13, %v1679_v28  ;;  %v3164_v1 = vld [vmem:[#allocation11_spill] sm:$0xff] }
 0x300   :  { %v1083_v10 = vsel %vm847_vm11, %v3151_v3, %v3149_v27  ;;  %v908_v54 = vadd.f32 %v907_v35, %v906_v37  ;;  %v1089_v0 = vsel %vm225_vm3, %v1055_v21, 0.0  ;;  %v1097_v59 = vsel %vm225_vm3, %v1069_v18, 0.0  ;;  %v3165_v13 = vld [vmem:[#allocation31_spill] sm:$0xff]  ;;  %v3168_v27 = vld [vmem:[#allocation33_spill] sm:$0xff] }
 0x301   :  { %v1098_v57 = vsel %vm225_vm3, %v1083_v10, 0.0  ;;  %v900_v49 = vrot.slane %v899_v17, 2  ;;  %v1090_v44 = vadd.f32 %v1089_v0, %v1088_v60  ;;  %v3154_v40 = vrot.slane %v3153_v36, 1 }
 0x302   :  { %v1099_v62 = vadd.f32 %v1098_v57, %v1097_v59  ;;  %v909_v53 = vrot.slane %v908_v54, 2  ;;  %v3157_v15 = vrot.slane %v3156_v7, 1  ;;  %v3160_v51 = vrot.slane %v3159_v61, 1 }
 0x303   :  { %v1235_v29 = vsel %vm847_vm11, %v3154_v40, %v3152_v8  ;;  %v901_v42 = vadd.f32 %v900_v49, %v899_v17  ;;  %v1091_v14 = vrot.slane %v1090_v44, 4  ;;  %v3163_v25 = vrot.slane %v3162_v19, 1  ;;  %v3167_v17 = vld [vmem:[#allocation34_spill] sm:$0xff] }
 0x304   :  { %v1249_v41 = vsel %vm847_vm11, %v3157_v15, %v3155_v16  ;;  %v1263_v9 = vsel %vm847_vm11, %v3160_v51, %v3158_v5  ;;  %v1100_v46 = vrot.slane %v1099_v62, 4  ;;  %v910_v47 = vadd.f32 %v909_v53, %v908_v54 }
 0x305   :  { %v1277_v4 = vsel %vm847_vm11, %v3163_v25, %v3161_v50  ;;  %v1282_v52 = vsel %vm225_vm3, %v1235_v29, 0.0  ;;  %v1283_v28 = vsel %vm225_vm3, %v1249_v41, 0.0  ;;  %v1291_v48 = vsel %vm225_vm3, %v1263_v9, 0.0 }
 0x306   :  { %v902_v58 = vrot.slane %v901_v42, 1  ;;  %v1092_v37 = vadd.f32 %v1091_v14, %v1090_v44  ;;  %v1101_v2 = vadd.f32 %v1100_v46, %v1099_v62  ;;  %v1284_v23 = vadd.f32 %v1283_v28, %v1282_v52 }
 0x307   :  { %v911_v31 = vrot.slane %v910_v47, 1  ;;  %v1107_v45 = vstv %s2881_s0  ;;  %v1292_v26 = vsel %vm225_vm3, %v1277_v4, 0.0  ;;  %v3166_v35 = vrot.slane %v3165_v13, 1 }
 0x308   :  { %v903_v39 = vadd.f32 %v902_v58, %v901_v42  ;;  %v1093_v30 = vrot.slane %v1092_v37, 2  ;;  %v1102_v21 = vrot.slane %v1101_v2, 2  ;;  %v1285_v6 = vrot.slane %v1284_v23, 4 }
 0x309   :  { %v1429_v33 = vsel %vm847_vm11, %v3166_v35, %v3164_v1  ;;  %v912_v24 = vadd.f32 %v911_v31, %v910_v47  ;;  %v1293_v34 = vadd.f32 %v1292_v26, %v1291_v48  ;;  %v1443_v18 = vsel %vm847_vm11, %v1442_v43, %v2775_v38 }
 0x30a   :  { %v3169_v32 = vrot.slane %v3168_v27, 1  ;;  %v915_v10 = vadd.f32 %v914_v22, %v903_v39  ;;  %v1094_v60 = vadd.f32 %v1093_v30, %v1092_v37  ;;  %v1103_v54 = vadd.f32 %v1102_v21, %v1101_v2 }
 0x30b   :  { %v1286_v0 = vadd.f32 %v1285_v6, %v1284_v23  ;;  %v916_v59 = vadd.f32 %v914_v22, %v912_v24  ;;  %v1294_v57 = vrot.slane %v1293_v34, 4  ;;  %v1471_v49 = vsel %vm847_vm11, %v1470_v55, %v2784_v20 }
 0x30c   :  { %v1457_v3 = vsel %vm847_vm11, %v3169_v32, %v3167_v17  ;;  %v1476_v11 = vsel %vm225_vm3, %v1429_v33, 0.0  ;;  %v1095_v44 = vrot.slane %v1094_v60, 1  ;;  %v1104_v43 = vrot.slane %v1103_v54, 1 }
 0x30d   :  { %v1287_v38 = vrot.slane %v1286_v0, 2  ;;  %v1477_v62 = vsel %vm225_vm3, %v1443_v18, 0.0  ;;  %v919_v53 = vrot.slane %v916_v59, 7  ;;  %v1295_v8 = vadd.f32 %v1294_v57, %v1293_v34 }
 0x30e   :  { %v1478_v36 = vadd.f32 %v1477_v62, %v1476_v11  ;;  %v1485_v22 = vsel %vm225_vm3, %v1457_v3, 0.0  ;;  %v1096_v40 = vadd.f32 %v1095_v44, %v1094_v60  ;;  %v1105_v29 = vadd.f32 %v1104_v43, %v1103_v54 }
 0x30f   :  { %v1288_v16 = vadd.f32 %v1287_v38, %v1286_v0  ;;  %v1486_v12 = vsel %vm225_vm3, %v1471_v49, 0.0  ;;  %v920_v55 = vsel %vm829_vm5, %v919_v53, %v915_v10  ;;  %v1296_v20 = vrot.slane %v1295_v8, 2 }
 0x310   :  { %v1479_v7 = vrot.slane %v1478_v36, 4  ;;  %v1487_v15 = vadd.f32 %v1486_v12, %v1485_v22  ;;  %922 = vst.msk [vmem:[#allocation5] sm:$0x3] %vm499_vm4, %v920_v55  ;;  %v1109_v41 = vadd.f32 %v1107_v45, %v1105_v29  ;;  %v1673_v42 = vrot.slane %v2883_v63, 4 }
 0x311   :  { %v1289_v5 = vrot.slane %v1288_v16, 1  ;;  %v1297_v61 = vadd.f32 %v1296_v20, %v1295_v8  ;;  %v1108_v14 = vadd.f32 %v1107_v45, %v1096_v40  ;;  %v1682_v50 = vrot.slane %v2893_v56, 4 }
 0x312   :  { %v1480_v51 = vadd.f32 %v1479_v7, %v1478_v36  ;;  %v1488_v9 = vrot.slane %v1487_v15, 4  ;;  %v1112_v46 = vrot.slane %v1109_v41, 7  ;;  %v1674_v47 = vadd.f32 %v1673_v42, %v2883_v63 }
 0x313   :  { %v1298_v19 = vrot.slane %v1297_v61, 1  ;;  %v1290_v28 = vadd.f32 %v1289_v5, %v1288_v16  ;;  %v1301_v48 = vstv %s2933_s5  ;;  %v1683_v58 = vadd.f32 %v1682_v50, %v2893_v56 }
 0x314   :  { %v1481_v25 = vrot.slane %v1480_v51, 2  ;;  %v1489_v4 = vadd.f32 %v1488_v9, %v1487_v15  ;;  %v1113_v52 = vsel %vm829_vm5, %v1112_v46, %v1108_v14  ;;  %v1675_v31 = vrot.slane %v1674_v47, 2 }
 0x315   :  { %1116 = vst.msk [vmem:[#allocation5 + $0x2] sm:$0x3] %vm499_vm4, %v1113_v52  ;;  %v1299_v37 = vadd.f32 %v1298_v19, %v1297_v61  ;;  %v1684_v45 = vrot.slane %v1683_v58, 2  ;;  %v1302_v33 = vadd.f32 %v1301_v48, %v1290_v28  ;;  %v1495_v6 = vstv %s2941_s29 }
 0x316   :  { %v1482_v2 = vadd.f32 %v1481_v25, %v1480_v51  ;;  %v1490_v23 = vrot.slane %v1489_v4, 2  ;;  %v1676_v13 = vadd.f32 %v1675_v31, %v1674_v47  ;;  %v1689_v17 = vstv %s2945_s30 }
 0x317   :  { %v1303_v26 = vadd.f32 %v1301_v48, %v1299_v37  ;;  %v1685_v35 = vadd.f32 %v1684_v45, %v1683_v58 }
 0x318   :  { %v1483_v1 = vrot.slane %v1482_v2, 1  ;;  %v1491_v63 = vadd.f32 %v1490_v23, %v1489_v4  ;;  %v1677_v21 = vrot.slane %v1676_v13, 1 }
 0x319   :  { %v1306_v39 = vrot.slane %v1303_v26, 7  ;;  %v1686_v56 = vrot.slane %v1685_v35, 1 }
 0x31a   :  { %v1492_v30 = vrot.slane %v1491_v63, 1  ;;  %v1484_v34 = vadd.f32 %v1483_v1, %v1482_v2  ;;  %v1678_v27 = vadd.f32 %v1677_v21, %v1676_v13 }
 0x31b   :  { %v1307_v24 = vsel %vm829_vm5, %v1306_v39, %v1302_v33  ;;  %v1687_v32 = vadd.f32 %v1686_v56, %v1685_v35 }
 0x31c   :  { %v1493_v18 = vadd.f32 %v1492_v30, %v1491_v63  ;;  %1310 = vst.msk [vmem:[#allocation5 + $0x4] sm:$0x3] %vm499_vm4, %v1307_v24  ;;  %v1496_v60 = vadd.f32 %v1495_v6, %v1484_v34  ;;  %v1690_v0 = vadd.f32 %v1689_v17, %v1678_v27 }
 0x31d   :  { %v1691_v10 = vadd.f32 %v1689_v17, %v1687_v32 }
 0x31e   :  { %v1497_v3 = vadd.f32 %v1495_v6, %v1493_v18 }
 0x31f   :  { %v1694_v59 = vrot.slane %v1691_v10, 7 }
 0x320   :  { %v1500_v54 = vrot.slane %v1497_v3, 7 }
 0x321   :  { %v1695_v49 = vsel %vm829_vm5, %v1694_v59, %v1690_v0 }
 0x322   :  { %v1501_v57 = vsel %vm829_vm5, %v1500_v54, %v1496_v60  ;;  %1698 = vst.msk [vmem:[#allocation5 + $0x8] sm:$0x3] %vm499_vm4, %v1695_v49 }
 0x323   :  { %1504 = vst.msk [vmem:[#allocation5 + $0x6] sm:$0x3] %vm499_vm4, %v1501_v57 }
 0x324   :  { %1763 = shalt.err (!%p1760_p9)
}
 0x325   :  { %s1764_s12 = scalar_lea.hbm %s2979_s6, 160 }
 0x326   :  { %p1765_p10 = scmp.ne.s32.totalorder %s2979_s6, %s1764_s12  ;;  %p1768_p11 = scmp.lt.u32.totalorder %s1764_s12, %s2979_s6 }
 0x328   :  { %p1770_p12 = pnand %p1768_p11, %p1765_p10 }
 0x32a   :  { %1773 = shalt.err (!%p1770_p12)
}
 0x32b   :  { %s1785_s17 = smov 2  }
 0x32c   :  { %1710 = dma.vmem_to_hbm [thread:$0]  %s1705_s8, 160, %s2979_s6, [#allocation3], %s1779_s28, %s1779_s28, %s1785_s17  }
 0x32d   :  { %1776 = dma.done.wait [#allocation3], 160  }
 0x32e   :  { %1777 = vsyncadd [#allocation3], 4294967136 }
 0x32f   :  { %1714 = vsyncpa [#allocation3], 1 }
 0x330   :  { %1715 = vsyncpa [#allocation4], 1 }

</bundles_post_ra>
